<compile_context>
chip_gen: v6e
topology: v6e:2x2x1
jax: 0.10.0
libtpu: 0.0.40
codegen_flags: <defaults>
</compile_context>

<pallas_src>
import functools

import jax
import jax.numpy as jnp
from jax.experimental import pallas as pl
from jax.experimental.pallas import tpu as pltpu


def _self_attention_kernel(xq_ref, xk_ref, wq_ref, wkv_ref, wout_ref, bout_ref,
                           o_ref, q_scr, m_scr, l_scr, acc_scr,
                           *, heads, dim_heads):
    h, e = heads, dim_heads
    he = h * e
    ki = pl.program_id(2)
    nk = pl.num_programs(2)
    cdt = xq_ref.dtype                       # compute (MXU operand) dtype, bf16 by default
    scale = e ** (-0.5)

    # ---- first kv step: project Q for this query tile, reset online-softmax state ----
    @pl.when(ki == 0)
    def _():
        xq = xq_ref[...]                                              # (tq, D)
        q = jnp.dot(xq, wq_ref[...],
                    preferred_element_type=jnp.float32)               # (tq, H*e), f32 acc
        q = (q * scale).astype(cdt)           # fold 1/sqrt(e) once: O(tq*He), not O(tq*tk)
        tq = q.shape[0]
        q_scr[...] = jnp.transpose(q.reshape(tq, h, e), (1, 0, 2))    # (H, tq, e)
        m_scr[...] = jnp.full(m_scr.shape, -jnp.inf, dtype=jnp.float32)
        l_scr[...] = jnp.zeros(l_scr.shape, dtype=jnp.float32)
        acc_scr[...] = jnp.zeros(acc_scr.shape, dtype=jnp.float32)

    # ---- fused K/V projection for the current kv tile (one matmul, packed columns) ----
    xk = xk_ref[...]                                                  # (tk, D)
    kv = jnp.dot(xk, wkv_ref[...],
                 preferred_element_type=jnp.float32).astype(cdt)      # (tk, 2*H*e)
    tk = xk.shape[0]
    kv3 = jnp.transpose(kv.reshape(tk, 2 * h, e), (1, 0, 2))          # (2H, tk, e)
    k3 = kv3[:h]                                                      # (H, tk, e)
    v3 = kv3[h:]                                                      # (H, tk, e)

    # ---- per-head scores + online softmax (f32 state, bf16 MXU operands) ----
    s = jnp.einsum("hqe,hke->hqk", q_scr[...], k3,
                   preferred_element_type=jnp.float32)                # (H, tq, tk) f32
    m_prev = m_scr[...]                                               # (H, tq, 1)
    m_new = jnp.maximum(m_prev, jnp.max(s, axis=-1, keepdims=True))
    alpha = jnp.exp(m_prev - m_new)
    p = jnp.exp(s - m_new)
    l_scr[...] = alpha * l_scr[...] + jnp.sum(p, axis=-1, keepdims=True)
    acc_scr[...] = alpha * acc_scr[...] + jnp.einsum(
        "hqk,hke->hqe", p.astype(cdt), v3, preferred_element_type=jnp.float32)
    m_scr[...] = m_new

    # ---- last kv step: normalize, merge heads (one relayout), output projection ----
    @pl.when(ki == nk - 1)
    def _():
        o = acc_scr[...] * pl.reciprocal(l_scr[...], approx=True)     # (H, tq, e) f32
        o = o.astype(cdt)
        tq = o.shape[1]
        o2 = jnp.transpose(o, (1, 0, 2)).reshape(tq, he)              # (tq, H*e) packed
        out = jnp.dot(o2, wout_ref[...],
                      preferred_element_type=jnp.float32)             # (tq, D), K = H*e
        out = out + bout_ref[...]                                     # (1, D) broadcasts
        o_ref[...] = out.astype(o_ref.dtype)


def _pick_tile(t, preferred=(256, 128, 64, 32, 16, 8)):
    for p in preferred:
        if t % p == 0:
            return p
    return t


def _vmem_limit_bytes():
    # Derive the VMEM request from the actual part (128 MiB v5e/v6e, 64 MiB v7x) and
    # leave ~25% headroom for Pallas's double-buffered I/O blocks and internal scratch.
    try:
        return int(pltpu.get_tpu_info().vmem_capacity_bytes) * 3 // 4
    except Exception:
        return None   # fall back to the compiler's default scoped-VMEM limit


def self_attention_pallas(x, wq, wkv, wout, bout, *, heads, dim_heads,
                          q_tile=None, kv_tile=None, compute_dtype=jnp.bfloat16):
    """x:(B,T,D), wq:(D,He), wkv:(D,2*He), wout:(He,D), bout:(1,D); He = heads*dim_heads."""
    b, t, d = x.shape
    e = dim_heads
    he = heads * e
    assert wq.shape == (d, he) and wkv.shape == (d, 2 * he)
    assert wout.shape == (he, d) and bout.shape == (1, d)

    tq = _pick_tile(t) if q_tile is None else q_tile
    tk = _pick_tile(t) if kv_tile is None else kv_tile
    assert t % tq == 0 and t % tk == 0, "q_tile / kv_tile must divide the sequence length"

    cdt = compute_dtype
    x_c = x.astype(cdt)
    wq_c, wkv_c, wout_c = wq.astype(cdt), wkv.astype(cdt), wout.astype(cdt)
    bout_f = bout.astype(jnp.float32)

    grid = (b, t // tq, t // tk)
    kernel = functools.partial(_self_attention_kernel, heads=heads, dim_heads=e)

    cp_kwargs = dict(dimension_semantics=("parallel", "parallel", "arbitrary"))
    vmem_limit = _vmem_limit_bytes()
    if vmem_limit is not None:
        cp_kwargs["vmem_limit_bytes"] = vmem_limit
    compiler_params = pltpu.CompilerParams(**cp_kwargs)

    out_shape = jax.ShapeDtypeStruct((b, t, d), x.dtype)
    scratch_shapes = [
        pltpu.VMEM((heads, tq, e), cdt),           # Q of the current query tile
        pltpu.VMEM((heads, tq, 1), jnp.float32),   # running max
        pltpu.VMEM((heads, tq, 1), jnp.float32),   # running sum
        pltpu.VMEM((heads, tq, e), jnp.float32),   # output accumulator
    ]

    def build(single_buffer_weights):
        w_kwargs = ({"pipeline_mode": pl.Buffered(1)} if single_buffer_weights else {})
        in_specs = [
            pl.BlockSpec((None, tq, d), lambda bi, qi, ki: (bi, qi, 0)),   # x -> q tile
            pl.BlockSpec((None, tk, d), lambda bi, qi, ki: (bi, ki, 0)),   # x -> kv tile
            # Grid-invariant weights/bias: constant index_map keeps one block resident in
            # VMEM; single buffering reclaims the never-used second pipeline buffer.
            pl.BlockSpec((d, he), lambda bi, qi, ki: (0, 0), **w_kwargs),
            pl.BlockSpec((d, 2 * he), lambda bi, qi, ki: (0, 0), **w_kwargs),
            pl.BlockSpec((he, d), lambda bi, qi, ki: (0, 0), **w_kwargs),
            pl.BlockSpec((1, d), lambda bi, qi, ki: (0, 0), **w_kwargs),
        ]
        out_specs = pl.BlockSpec((None, tq, d), lambda bi, qi, ki: (bi, qi, 0))
        return pl.pallas_call(
            kernel,
            out_shape=out_shape,
            grid_spec=pltpu.PrefetchScalarGridSpec(
                num_scalar_prefetch=0,
                grid=grid,
                in_specs=in_specs,
                out_specs=out_specs,
                scratch_shapes=scratch_shapes,
            ),
            compiler_params=compiler_params,
        )

    args = (x_c, x_c, wq_c, wkv_c, wout_c, bout_f)
    try:
        return jax.block_until_ready(build(True)(*args))
    except Exception:
        # This jax/Mosaic build rejects pl.Buffered(1) single-buffering; fall back to the
        # default double-buffered weight blocks (layout and results are identical).
        return jax.block_until_ready(build(False)(*args))


def self_attention_reference(x, wq, wkv, wout, bout, *, heads, dim_heads):
    """Pure-JAX mirror of the PyTorch forward (for verification)."""
    b, t, d = x.shape
    dh = heads * dim_heads
    q = x @ wq
    kv = x @ wkv
    k, v = kv[..., :dh], kv[..., dh:]

    def merge_heads(z):
        return z.reshape(b, t, heads, dim_heads).transpose(0, 2, 1, 3).reshape(
            b * heads, t, dim_heads)

    q, k, v = map(merge_heads, (q, k, v))
    dots = jnp.einsum("bie,bje->bij", q, k) * dim_heads ** (-0.5)
    dots = jax.nn.softmax(dots, axis=-1)
    out = jnp.einsum("bij,bje->bie", dots, v)
    out = out.reshape(b, heads, t, dim_heads).transpose(0, 2, 1, 3).reshape(b, t, dh)
    return out @ wout + bout[0]


if __name__ == "__main__":
    # Small shapes consistent with the module: x is (batch, seq, dim).
    batch, seq, dim = 2, 8, 32
    heads = 4
    dim_heads = dim // heads          # 8
    dim_hidden = heads * dim_heads    # 32

    key = jax.random.PRNGKey(0)
    kx, kq, kkv, kwo, kbo, kx2 = jax.random.split(key, 6)

    x = jax.random.normal(kx, (batch, seq, dim), dtype=jnp.float32)
    wq = jax.random.normal(kq, (dim, dim_hidden), dtype=jnp.float32) * 0.1
    wkv = jax.random.normal(kkv, (dim, 2 * dim_hidden), dtype=jnp.float32) * 0.1
    wout = jax.random.normal(kwo, (dim_hidden, dim), dtype=jnp.float32) * 0.1
    bout = jax.random.normal(kbo, (1, dim), dtype=jnp.float32) * 0.1

    ref = self_attention_reference(x, wq, wkv, wout, bout,
                                   heads=heads, dim_heads=dim_heads)

    # f32-operand path (tolerance allows the approx EUP reciprocal in the softmax).
    out_f32 = jax.block_until_ready(
        self_attention_pallas(x, wq, wkv, wout, bout, heads=heads,
                              dim_heads=dim_heads, compute_dtype=jnp.float32))
    assert out_f32.shape == (batch, seq, dim)
    assert jnp.allclose(out_f32, ref, atol=5e-3, rtol=5e-3), "f32 kernel mismatch vs reference"

    # Default path: bf16 MXU operands, f32 accumulation / f32 softmax.
    out_bf16 = jax.block_until_ready(
        self_attention_pallas(x, wq, wkv, wout, bout,
                              heads=heads, dim_heads=dim_heads))
    assert out_bf16.shape == (batch, seq, dim)
    assert jnp.allclose(out_bf16, ref, atol=5e-2, rtol=5e-2), "bf16 kernel mismatch vs reference"

    # Longer sequence forcing the flash path: multiple query tiles and kv tiles
    # (online softmax across kv steps, per-query-tile output blocks).
    seq2 = 32
    x2 = jax.random.normal(kx2, (batch, seq2, dim), dtype=jnp.float32)
    ref2 = self_attention_reference(x2, wq, wkv, wout, bout,
                                    heads=heads, dim_heads=dim_heads)
    out2 = jax.block_until_ready(
        self_attention_pallas(x2, wq, wkv, wout, bout, heads=heads,
                              dim_heads=dim_heads, q_tile=16, kv_tile=8,
                              compute_dtype=jnp.float32))
    assert out2.shape == (batch, seq2, dim)
    assert jnp.allclose(out2, ref2, atol=5e-3, rtol=5e-3), "tiled kernel mismatch vs reference"

    print("KERNEL_OK")
</pallas_src>

<mosaic_0001>
module attributes {stable_mosaic.version = 11 : i64} {
  func.func @_self_attention_kernel(%arg0: i32, %arg1: i32, %arg2: i32, %arg3: memref<1x8x32xf32, #tpu.memory_space<vmem>>, %arg4: memref<1x8x32xf32, #tpu.memory_space<vmem>>, %arg5: memref<32x32xf32, #tpu.memory_space<vmem>>, %arg6: memref<32x64xf32, #tpu.memory_space<vmem>>, %arg7: memref<32x32xf32, #tpu.memory_space<vmem>>, %arg8: memref<1x32xf32, #tpu.memory_space<vmem>>, %arg9: memref<1x8x32xf32, #tpu.memory_space<vmem>>, %arg10: memref<4x8x8xf32, #tpu.memory_space<vmem>>, %arg11: memref<4x8x1xf32, #tpu.memory_space<vmem>>, %arg12: memref<4x8x1xf32, #tpu.memory_space<vmem>>, %arg13: memref<4x8x8xf32, #tpu.memory_space<vmem>>) attributes {dimension_semantics = [#tpu.dimension_semantics<parallel>, #tpu.dimension_semantics<parallel>, #tpu.dimension_semantics<arbitrary>], iteration_bounds = array<i64: 2, 1, 1>, scalar_prefetch = 0 : i64, scratch_operands = 4 : i64, tpu.core_type = #tpu.core_type<tc>, window_params = [{transform_indices = @transform_0, window_bounds = array<i64: 1, 8, 32>}, {transform_indices = @transform_1, window_bounds = array<i64: 1, 8, 32>}, {pipeline_mode = #tpu.pipeline_mode<synchronous>, transform_indices = @transform_2, window_bounds = array<i64: 32, 32>}, {pipeline_mode = #tpu.pipeline_mode<synchronous>, transform_indices = @transform_3, window_bounds = array<i64: 32, 64>}, {pipeline_mode = #tpu.pipeline_mode<synchronous>, transform_indices = @transform_4, window_bounds = array<i64: 32, 32>}, {pipeline_mode = #tpu.pipeline_mode<synchronous>, transform_indices = @transform_5, window_bounds = array<i64: 1, 32>}, {transform_indices = @transform_6, window_bounds = array<i64: 1, 8, 32>}]} {
    %c0_i32 = arith.constant 0 : i32
    %0 = arith.cmpi eq, %arg2, %c0_i32 : i32
    %1 = arith.extui %0 : i1 to i32
    %c0_i32_0 = arith.constant 0 : i32
    %2 = arith.cmpi ne, %1, %c0_i32_0 : i32
    scf.if %2 {
      %c0_32 = arith.constant 0 : index
      %c0_33 = arith.constant 0 : index
      %c0_34 = arith.constant 0 : index
      %38 = vector.load %arg3[%c0_32, %c0_33, %c0_34] : memref<1x8x32xf32, #tpu.memory_space<vmem>>, vector<1x8x32xf32>
      %39 = vector.shape_cast %38 : vector<1x8x32xf32> to vector<8x32xf32>
      %c0_35 = arith.constant 0 : index
      %c0_36 = arith.constant 0 : index
      %40 = vector.load %arg5[%c0_35, %c0_36] : memref<32x32xf32, #tpu.memory_space<vmem>>, vector<32x32xf32>
      %cst_37 = arith.constant dense<0.000000e+00> : vector<8x32xf32>
      %41 = tpu.matmul %39, %40, %cst_37 {dimension_numbers = #tpu.dot_dimension_numbers<[1], [0], [0], [1], [0, 0, 1, 1], [], []>} : vector<8x32xf32>, vector<32x32xf32>, vector<8x32xf32> -> vector<8x32xf32>
      %cst_38 = arith.constant 0.353553385 : f32
      %42 = vector.broadcast %cst_38 : f32 to vector<8x32xf32>
      %43 = arith.mulf %41, %42 : vector<8x32xf32>
      %44 = vector.shape_cast %43 : vector<8x32xf32> to vector<8x4x8xf32>
      %45 = tpu.transpose %44, [1, 0, 2] : vector<8x4x8xf32> -> vector<4x8x8xf32>
      %c0_39 = arith.constant 0 : index
      %c0_40 = arith.constant 0 : index
      %c0_41 = arith.constant 0 : index
      %46 = vector.load %arg10[%c0_39, %c0_40, %c0_41] : memref<4x8x8xf32, #tpu.memory_space<vmem>>, vector<4x8x8xf32>
      tpu.vector_store %arg10[%c0_39, %c0_40, %c0_41], %45 {strides = array<i32>} : memref<4x8x8xf32, #tpu.memory_space<vmem>>, vector<4x8x8xf32>,
      %cst_42 = arith.constant 0xFF800000 : f32
      %47 = vector.broadcast %cst_42 : f32 to vector<4x8x1xf32>
      %c0_43 = arith.constant 0 : index
      %c0_44 = arith.constant 0 : index
      %c0_45 = arith.constant 0 : index
      %48 = vector.load %arg11[%c0_43, %c0_44, %c0_45] : memref<4x8x1xf32, #tpu.memory_space<vmem>>, vector<4x8x1xf32>
      tpu.vector_store %arg11[%c0_43, %c0_44, %c0_45], %47 {strides = array<i32>} : memref<4x8x1xf32, #tpu.memory_space<vmem>>, vector<4x8x1xf32>,
      %cst_46 = arith.constant 0.000000e+00 : f32
      %49 = vector.broadcast %cst_46 : f32 to vector<4x8x1xf32>
      %c0_47 = arith.constant 0 : index
      %c0_48 = arith.constant 0 : index
      %c0_49 = arith.constant 0 : index
      %50 = vector.load %arg12[%c0_47, %c0_48, %c0_49] : memref<4x8x1xf32, #tpu.memory_space<vmem>>, vector<4x8x1xf32>
      tpu.vector_store %arg12[%c0_47, %c0_48, %c0_49], %49 {strides = array<i32>} : memref<4x8x1xf32, #tpu.memory_space<vmem>>, vector<4x8x1xf32>,
      %cst_50 = arith.constant 0.000000e+00 : f32
      %51 = vector.broadcast %cst_50 : f32 to vector<4x8x8xf32>
      %c0_51 = arith.constant 0 : index
      %c0_52 = arith.constant 0 : index
      %c0_53 = arith.constant 0 : index
      %52 = vector.load %arg13[%c0_51, %c0_52, %c0_53] : memref<4x8x8xf32, #tpu.memory_space<vmem>>, vector<4x8x8xf32>
      tpu.vector_store %arg13[%c0_51, %c0_52, %c0_53], %51 {strides = array<i32>} : memref<4x8x8xf32, #tpu.memory_space<vmem>>, vector<4x8x8xf32>,
    } else {
    }
    %c0 = arith.constant 0 : index
    %c0_1 = arith.constant 0 : index
    %c0_2 = arith.constant 0 : index
    %3 = vector.load %arg4[%c0, %c0_1, %c0_2] : memref<1x8x32xf32, #tpu.memory_space<vmem>>, vector<1x8x32xf32>
    %4 = vector.shape_cast %3 : vector<1x8x32xf32> to vector<8x32xf32>
    %c0_3 = arith.constant 0 : index
    %c0_4 = arith.constant 0 : index
    %5 = vector.load %arg6[%c0_3, %c0_4] : memref<32x64xf32, #tpu.memory_space<vmem>>, vector<32x64xf32>
    %cst = arith.constant dense<0.000000e+00> : vector<8x64xf32>
    %6 = tpu.matmul %4, %5, %cst {dimension_numbers = #tpu.dot_dimension_numbers<[1], [0], [0], [1], [0, 0, 1, 1], [], []>} : vector<8x32xf32>, vector<32x64xf32>, vector<8x64xf32> -> vector<8x64xf32>
    %7 = vector.shape_cast %6 : vector<8x64xf32> to vector<8x8x8xf32>
    %8 = tpu.transpose %7, [1, 0, 2] : vector<8x8x8xf32> -> vector<8x8x8xf32>
    %9 = vector.extract_strided_slice %8 {offsets = [0, 0, 0], sizes = [4, 8, 8], strides = [1, 1, 1]} : vector<8x8x8xf32> to vector<4x8x8xf32>
    %10 = vector.extract_strided_slice %8 {offsets = [4, 0, 0], sizes = [4, 8, 8], strides = [1, 1, 1]} : vector<8x8x8xf32> to vector<4x8x8xf32>
    %c0_5 = arith.constant 0 : index
    %c0_6 = arith.constant 0 : index
    %c0_7 = arith.constant 0 : index
    %11 = vector.load %arg10[%c0_5, %c0_6, %c0_7] : memref<4x8x8xf32, #tpu.memory_space<vmem>>, vector<4x8x8xf32>
    "tpu.trace_start"() <{level = 10 : i32, message = "hqe,hke->hqk"}> : () -> ()
    %cst_8 = arith.constant dense<0.000000e+00> : vector<4x8x8xf32>
    %12 = tpu.matmul %11, %9, %cst_8 {dimension_numbers = #tpu.dot_dimension_numbers<[2], [2], [1], [1], [0, 0, 0, 1, 1, 1], [0], [0]>} : vector<4x8x8xf32>, vector<4x8x8xf32>, vector<4x8x8xf32> -> vector<4x8x8xf32>
    "tpu.trace_stop"() : () -> ()
    %c0_9 = arith.constant 0 : index
    %c0_10 = arith.constant 0 : index
    %c0_11 = arith.constant 0 : index
    %13 = vector.load %arg11[%c0_9, %c0_10, %c0_11] : memref<4x8x1xf32, #tpu.memory_space<vmem>>, vector<4x8x1xf32>
    %cst_12 = arith.constant dense<0xFF800000> : vector<4x8xf32>
    %14 = vector.multi_reduction <maximumf>, %12, %cst_12 [2] : vector<4x8x8xf32> to vector<4x8xf32>
    %15 = vector.shape_cast %14 : vector<4x8xf32> to vector<4x8x1xf32>
    %16 = arith.maximumf %13, %15 : vector<4x8x1xf32>
    %17 = arith.subf %13, %16 : vector<4x8x1xf32>
    %18 = math.exp %17 : vector<4x8x1xf32>
    %19 = vector.broadcast %16 : vector<4x8x1xf32> to vector<4x8x8xf32>
    %20 = arith.subf %12, %19 : vector<4x8x8xf32>
    %21 = math.exp %20 : vector<4x8x8xf32>
    %c0_13 = arith.constant 0 : index
    %c0_14 = arith.constant 0 : index
    %c0_15 = arith.constant 0 : index
    %22 = vector.load %arg12[%c0_13, %c0_14, %c0_15] : memref<4x8x1xf32, #tpu.memory_space<vmem>>, vector<4x8x1xf32>
    %23 = arith.mulf %18, %22 : vector<4x8x1xf32>
    %cst_16 = arith.constant dense<0.000000e+00> : vector<4x8xf32>
    %24 = vector.multi_reduction <add>, %21, %cst_16 [2] : vector<4x8x8xf32> to vector<4x8xf32>
    %25 = vector.shape_cast %24 : vector<4x8xf32> to vector<4x8x1xf32>
    %26 = arith.addf %23, %25 : vector<4x8x1xf32>
    %c0_17 = arith.constant 0 : index
    %c0_18 = arith.constant 0 : index
    %c0_19 = arith.constant 0 : index
    %27 = vector.load %arg12[%c0_17, %c0_18, %c0_19] : memref<4x8x1xf32, #tpu.memory_space<vmem>>, vector<4x8x1xf32>
    tpu.vector_store %arg12[%c0_17, %c0_18, %c0_19], %26 {strides = array<i32>} : memref<4x8x1xf32, #tpu.memory_space<vmem>>, vector<4x8x1xf32>,
    %c0_20 = arith.constant 0 : index
    %c0_21 = arith.constant 0 : index
    %c0_22 = arith.constant 0 : index
    %28 = vector.load %arg13[%c0_20, %c0_21, %c0_22] : memref<4x8x8xf32, #tpu.memory_space<vmem>>, vector<4x8x8xf32>
    %29 = vector.broadcast %18 : vector<4x8x1xf32> to vector<4x8x8xf32>
    %30 = arith.mulf %29, %28 : vector<4x8x8xf32>
    "tpu.trace_start"() <{level = 10 : i32, message = "hqk,hke->hqe"}> : () -> ()
    %cst_23 = arith.constant dense<0.000000e+00> : vector<4x8x8xf32>
    %31 = tpu.matmul %21, %10, %cst_23 {dimension_numbers = #tpu.dot_dimension_numbers<[2], [1], [1], [2], [0, 0, 0, 1, 1, 2], [0], [0]>} : vector<4x8x8xf32>, vector<4x8x8xf32>, vector<4x8x8xf32> -> vector<4x8x8xf32>
    "tpu.trace_stop"() : () -> ()
    %32 = arith.addf %30, %31 : vector<4x8x8xf32>
    %c0_24 = arith.constant 0 : index
    %c0_25 = arith.constant 0 : index
    %c0_26 = arith.constant 0 : index
    %33 = vector.load %arg13[%c0_24, %c0_25, %c0_26] : memref<4x8x8xf32, #tpu.memory_space<vmem>>, vector<4x8x8xf32>
    tpu.vector_store %arg13[%c0_24, %c0_25, %c0_26], %32 {strides = array<i32>} : memref<4x8x8xf32, #tpu.memory_space<vmem>>, vector<4x8x8xf32>,
    %c0_27 = arith.constant 0 : index
    %c0_28 = arith.constant 0 : index
    %c0_29 = arith.constant 0 : index
    %34 = vector.load %arg11[%c0_27, %c0_28, %c0_29] : memref<4x8x1xf32, #tpu.memory_space<vmem>>, vector<4x8x1xf32>
    tpu.vector_store %arg11[%c0_27, %c0_28, %c0_29], %16 {strides = array<i32>} : memref<4x8x1xf32, #tpu.memory_space<vmem>>, vector<4x8x1xf32>,
    %c0_i32_30 = arith.constant 0 : i32
    %35 = arith.cmpi eq, %arg2, %c0_i32_30 : i32
    %36 = arith.extui %35 : i1 to i32
    %c0_i32_31 = arith.constant 0 : i32
    %37 = arith.cmpi ne, %36, %c0_i32_31 : i32
    scf.if %37 {
      %c0_32 = arith.constant 0 : index
      %c0_33 = arith.constant 0 : index
      %c0_34 = arith.constant 0 : index
      %38 = vector.load %arg13[%c0_32, %c0_33, %c0_34] : memref<4x8x8xf32, #tpu.memory_space<vmem>>, vector<4x8x8xf32>
      %c0_35 = arith.constant 0 : index
      %c0_36 = arith.constant 0 : index
      %c0_37 = arith.constant 0 : index
      %39 = vector.load %arg12[%c0_35, %c0_36, %c0_37] : memref<4x8x1xf32, #tpu.memory_space<vmem>>, vector<4x8x1xf32>
      %40 = tpu.reciprocal %39 {approx = true} : vector<4x8x1xf32> -> vector<4x8x1xf32>
      %41 = vector.broadcast %40 : vector<4x8x1xf32> to vector<4x8x8xf32>
      %42 = arith.mulf %38, %41 : vector<4x8x8xf32>
      %43 = tpu.transpose %42, [1, 0, 2] : vector<4x8x8xf32> -> vector<8x4x8xf32>
      %44 = vector.shape_cast %43 : vector<8x4x8xf32> to vector<8x32xf32>
      %c0_38 = arith.constant 0 : index
      %c0_39 = arith.constant 0 : index
      %45 = vector.load %arg7[%c0_38, %c0_39] : memref<32x32xf32, #tpu.memory_space<vmem>>, vector<32x32xf32>
      %cst_40 = arith.constant dense<0.000000e+00> : vector<8x32xf32>
      %46 = tpu.matmul %44, %45, %cst_40 {dimension_numbers = #tpu.dot_dimension_numbers<[1], [0], [0], [1], [0, 0, 1, 1], [], []>} : vector<8x32xf32>, vector<32x32xf32>, vector<8x32xf32> -> vector<8x32xf32>
      %c0_41 = arith.constant 0 : index
      %c0_42 = arith.constant 0 : index
      %47 = vector.load %arg8[%c0_41, %c0_42] : memref<1x32xf32, #tpu.memory_space<vmem>>, vector<1x32xf32>
      %48 = vector.broadcast %47 : vector<1x32xf32> to vector<8x32xf32>
      %49 = arith.addf %46, %48 : vector<8x32xf32>
      %c0_43 = arith.constant 0 : index
      %c0_44 = arith.constant 0 : index
      %c0_45 = arith.constant 0 : index
      %50 = vector.load %arg9[%c0_43, %c0_44, %c0_45] : memref<1x8x32xf32, #tpu.memory_space<vmem>>, vector<1x8x32xf32>
      %51 = vector.shape_cast %50 : vector<1x8x32xf32> to vector<8x32xf32>
      %52 = vector.shape_cast %49 : vector<8x32xf32> to vector<1x8x32xf32>
      tpu.vector_store %arg9[%c0_43, %c0_44, %c0_45], %52 {strides = array<i32>} : memref<1x8x32xf32, #tpu.memory_space<vmem>>, vector<1x8x32xf32>,
    } else {
    }
    return
  }
  func.func @transform_0(%arg0: i32, %arg1: i32, %arg2: i32) -> (i32, i32, i32) {
    %c0_i32 = arith.constant 0 : i32
    %c0_i32_0 = arith.constant 0 : i32
    return %arg0, %arg1, %c0_i32 : i32, i32, i32
  }
  func.func @transform_1(%arg0: i32, %arg1: i32, %arg2: i32) -> (i32, i32, i32) {
    %c0_i32 = arith.constant 0 : i32
    %c0_i32_0 = arith.constant 0 : i32
    return %arg0, %arg2, %c0_i32 : i32, i32, i32
  }
  func.func @transform_2(%arg0: i32, %arg1: i32, %arg2: i32) -> (i32, i32) {
    %c0_i32 = arith.constant 0 : i32
    %c0_i32_0 = arith.constant 0 : i32
    %c0_i32_1 = arith.constant 0 : i32
    return %c0_i32, %c0_i32_0 : i32, i32
  }
  func.func @transform_3(%arg0: i32, %arg1: i32, %arg2: i32) -> (i32, i32) {
    %c0_i32 = arith.constant 0 : i32
    %c0_i32_0 = arith.constant 0 : i32
    %c0_i32_1 = arith.constant 0 : i32
    return %c0_i32, %c0_i32_0 : i32, i32
  }
  func.func @transform_4(%arg0: i32, %arg1: i32, %arg2: i32) -> (i32, i32) {
    %c0_i32 = arith.constant 0 : i32
    %c0_i32_0 = arith.constant 0 : i32
    %c0_i32_1 = arith.constant 0 : i32
    return %c0_i32, %c0_i32_0 : i32, i32
  }
  func.func @transform_5(%arg0: i32, %arg1: i32, %arg2: i32) -> (i32, i32) {
    %c0_i32 = arith.constant 0 : i32
    %c0_i32_0 = arith.constant 0 : i32
    %c0_i32_1 = arith.constant 0 : i32
    return %c0_i32, %c0_i32_0 : i32, i32
  }
  func.func @transform_6(%arg0: i32, %arg1: i32, %arg2: i32) -> (i32, i32, i32) {
    %c0_i32 = arith.constant 0 : i32
    %c0_i32_0 = arith.constant 0 : i32
    return %arg0, %arg1, %c0_i32 : i32, i32, i32
  }
}

module attributes {stable_mosaic.version = 11 : i64} {
  func.func @_self_attention_kernel(%arg0: i32, %arg1: i32, %arg2: i32, %arg3: memref<1x8x32xf32, #tpu.memory_space<vmem>>, %arg4: memref<1x8x32xf32, #tpu.memory_space<vmem>>, %arg5: memref<32x32xf32, #tpu.memory_space<vmem>>, %arg6: memref<32x64xf32, #tpu.memory_space<vmem>>, %arg7: memref<32x32xf32, #tpu.memory_space<vmem>>, %arg8: memref<1x32xf32, #tpu.memory_space<vmem>>, %arg9: memref<1x8x32xf32, #tpu.memory_space<vmem>>, %arg10: memref<4x8x8xf32, #tpu.memory_space<vmem>>, %arg11: memref<4x8x1xf32, #tpu.memory_space<vmem>>, %arg12: memref<4x8x1xf32, #tpu.memory_space<vmem>>, %arg13: memref<4x8x8xf32, #tpu.memory_space<vmem>>) attributes {dimension_semantics = [#tpu.dimension_semantics<parallel>, #tpu.dimension_semantics<parallel>, #tpu.dimension_semantics<arbitrary>], iteration_bounds = array<i64: 2, 1, 1>, scalar_prefetch = 0 : i64, scratch_operands = 4 : i64, tpu.core_type = #tpu.core_type<tc>, window_params = [{transform_indices = @transform_0, window_bounds = array<i64: 1, 8, 32>}, {transform_indices = @transform_1, window_bounds = array<i64: 1, 8, 32>}, {pipeline_mode = #tpu.pipeline_mode<synchronous>, transform_indices = @transform_2, window_bounds = array<i64: 32, 32>}, {pipeline_mode = #tpu.pipeline_mode<synchronous>, transform_indices = @transform_3, window_bounds = array<i64: 32, 64>}, {pipeline_mode = #tpu.pipeline_mode<synchronous>, transform_indices = @transform_4, window_bounds = array<i64: 32, 32>}, {pipeline_mode = #tpu.pipeline_mode<synchronous>, transform_indices = @transform_5, window_bounds = array<i64: 1, 32>}, {transform_indices = @transform_6, window_bounds = array<i64: 1, 8, 32>}]} {
    %c0_i32 = arith.constant 0 : i32
    %0 = arith.cmpi eq, %arg2, %c0_i32 : i32
    %1 = arith.extui %0 : i1 to i32
    %c0_i32_0 = arith.constant 0 : i32
    %2 = arith.cmpi ne, %1, %c0_i32_0 : i32
    scf.if %2 {
      %c0_32 = arith.constant 0 : index
      %c0_33 = arith.constant 0 : index
      %c0_34 = arith.constant 0 : index
      %38 = vector.load %arg3[%c0_32, %c0_33, %c0_34] : memref<1x8x32xf32, #tpu.memory_space<vmem>>, vector<1x8x32xf32>
      %39 = vector.shape_cast %38 : vector<1x8x32xf32> to vector<8x32xf32>
      %c0_35 = arith.constant 0 : index
      %c0_36 = arith.constant 0 : index
      %40 = vector.load %arg5[%c0_35, %c0_36] : memref<32x32xf32, #tpu.memory_space<vmem>>, vector<32x32xf32>
      %cst_37 = arith.constant dense<0.000000e+00> : vector<8x32xf32>
      %41 = tpu.matmul %39, %40, %cst_37 {dimension_numbers = #tpu.dot_dimension_numbers<[1], [0], [0], [1], [0, 0, 1, 1], [], []>} : vector<8x32xf32>, vector<32x32xf32>, vector<8x32xf32> -> vector<8x32xf32>
      %cst_38 = arith.constant 0.353553385 : f32
      %42 = vector.broadcast %cst_38 : f32 to vector<8x32xf32>
      %43 = arith.mulf %41, %42 : vector<8x32xf32>
      %44 = vector.shape_cast %43 : vector<8x32xf32> to vector<8x4x8xf32>
      %45 = tpu.transpose %44, [1, 0, 2] : vector<8x4x8xf32> -> vector<4x8x8xf32>
      %c0_39 = arith.constant 0 : index
      %c0_40 = arith.constant 0 : index
      %c0_41 = arith.constant 0 : index
      %46 = vector.load %arg10[%c0_39, %c0_40, %c0_41] : memref<4x8x8xf32, #tpu.memory_space<vmem>>, vector<4x8x8xf32>
      tpu.vector_store %arg10[%c0_39, %c0_40, %c0_41], %45 {strides = array<i32>} : memref<4x8x8xf32, #tpu.memory_space<vmem>>, vector<4x8x8xf32>,
      %cst_42 = arith.constant 0xFF800000 : f32
      %47 = vector.broadcast %cst_42 : f32 to vector<4x8x1xf32>
      %c0_43 = arith.constant 0 : index
      %c0_44 = arith.constant 0 : index
      %c0_45 = arith.constant 0 : index
      %48 = vector.load %arg11[%c0_43, %c0_44, %c0_45] : memref<4x8x1xf32, #tpu.memory_space<vmem>>, vector<4x8x1xf32>
      tpu.vector_store %arg11[%c0_43, %c0_44, %c0_45], %47 {strides = array<i32>} : memref<4x8x1xf32, #tpu.memory_space<vmem>>, vector<4x8x1xf32>,
      %cst_46 = arith.constant 0.000000e+00 : f32
      %49 = vector.broadcast %cst_46 : f32 to vector<4x8x1xf32>
      %c0_47 = arith.constant 0 : index
      %c0_48 = arith.constant 0 : index
      %c0_49 = arith.constant 0 : index
      %50 = vector.load %arg12[%c0_47, %c0_48, %c0_49] : memref<4x8x1xf32, #tpu.memory_space<vmem>>, vector<4x8x1xf32>
      tpu.vector_store %arg12[%c0_47, %c0_48, %c0_49], %49 {strides = array<i32>} : memref<4x8x1xf32, #tpu.memory_space<vmem>>, vector<4x8x1xf32>,
      %cst_50 = arith.constant 0.000000e+00 : f32
      %51 = vector.broadcast %cst_50 : f32 to vector<4x8x8xf32>
      %c0_51 = arith.constant 0 : index
      %c0_52 = arith.constant 0 : index
      %c0_53 = arith.constant 0 : index
      %52 = vector.load %arg13[%c0_51, %c0_52, %c0_53] : memref<4x8x8xf32, #tpu.memory_space<vmem>>, vector<4x8x8xf32>
      tpu.vector_store %arg13[%c0_51, %c0_52, %c0_53], %51 {strides = array<i32>} : memref<4x8x8xf32, #tpu.memory_space<vmem>>, vector<4x8x8xf32>,
    } else {
    }
    %c0 = arith.constant 0 : index
    %c0_1 = arith.constant 0 : index
    %c0_2 = arith.constant 0 : index
    %3 = vector.load %arg4[%c0, %c0_1, %c0_2] : memref<1x8x32xf32, #tpu.memory_space<vmem>>, vector<1x8x32xf32>
    %4 = vector.shape_cast %3 : vector<1x8x32xf32> to vector<8x32xf32>
    %c0_3 = arith.constant 0 : index
    %c0_4 = arith.constant 0 : index
    %5 = vector.load %arg6[%c0_3, %c0_4] : memref<32x64xf32, #tpu.memory_space<vmem>>, vector<32x64xf32>
    %cst = arith.constant dense<0.000000e+00> : vector<8x64xf32>
    %6 = tpu.matmul %4, %5, %cst {dimension_numbers = #tpu.dot_dimension_numbers<[1], [0], [0], [1], [0, 0, 1, 1], [], []>} : vector<8x32xf32>, vector<32x64xf32>, vector<8x64xf32> -> vector<8x64xf32>
    %7 = vector.shape_cast %6 : vector<8x64xf32> to vector<8x8x8xf32>
    %8 = tpu.transpose %7, [1, 0, 2] : vector<8x8x8xf32> -> vector<8x8x8xf32>
    %9 = vector.extract_strided_slice %8 {offsets = [0, 0, 0], sizes = [4, 8, 8], strides = [1, 1, 1]} : vector<8x8x8xf32> to vector<4x8x8xf32>
    %10 = vector.extract_strided_slice %8 {offsets = [4, 0, 0], sizes = [4, 8, 8], strides = [1, 1, 1]} : vector<8x8x8xf32> to vector<4x8x8xf32>
    %c0_5 = arith.constant 0 : index
    %c0_6 = arith.constant 0 : index
    %c0_7 = arith.constant 0 : index
    %11 = vector.load %arg10[%c0_5, %c0_6, %c0_7] : memref<4x8x8xf32, #tpu.memory_space<vmem>>, vector<4x8x8xf32>
    "tpu.trace_start"() <{level = 10 : i32, message = "hqe,hke->hqk"}> : () -> ()
    %cst_8 = arith.constant dense<0.000000e+00> : vector<4x8x8xf32>
    %12 = tpu.matmul %11, %9, %cst_8 {dimension_numbers = #tpu.dot_dimension_numbers<[2], [2], [1], [1], [0, 0, 0, 1, 1, 1], [0], [0]>} : vector<4x8x8xf32>, vector<4x8x8xf32>, vector<4x8x8xf32> -> vector<4x8x8xf32>
    "tpu.trace_stop"() : () -> ()
    %c0_9 = arith.constant 0 : index
    %c0_10 = arith.constant 0 : index
    %c0_11 = arith.constant 0 : index
    %13 = vector.load %arg11[%c0_9, %c0_10, %c0_11] : memref<4x8x1xf32, #tpu.memory_space<vmem>>, vector<4x8x1xf32>
    %cst_12 = arith.constant dense<0xFF800000> : vector<4x8xf32>
    %14 = vector.multi_reduction <maximumf>, %12, %cst_12 [2] : vector<4x8x8xf32> to vector<4x8xf32>
    %15 = vector.shape_cast %14 : vector<4x8xf32> to vector<4x8x1xf32>
    %16 = arith.maximumf %13, %15 : vector<4x8x1xf32>
    %17 = arith.subf %13, %16 : vector<4x8x1xf32>
    %18 = math.exp %17 : vector<4x8x1xf32>
    %19 = vector.broadcast %16 : vector<4x8x1xf32> to vector<4x8x8xf32>
    %20 = arith.subf %12, %19 : vector<4x8x8xf32>
    %21 = math.exp %20 : vector<4x8x8xf32>
    %c0_13 = arith.constant 0 : index
    %c0_14 = arith.constant 0 : index
    %c0_15 = arith.constant 0 : index
    %22 = vector.load %arg12[%c0_13, %c0_14, %c0_15] : memref<4x8x1xf32, #tpu.memory_space<vmem>>, vector<4x8x1xf32>
    %23 = arith.mulf %18, %22 : vector<4x8x1xf32>
    %cst_16 = arith.constant dense<0.000000e+00> : vector<4x8xf32>
    %24 = vector.multi_reduction <add>, %21, %cst_16 [2] : vector<4x8x8xf32> to vector<4x8xf32>
    %25 = vector.shape_cast %24 : vector<4x8xf32> to vector<4x8x1xf32>
    %26 = arith.addf %23, %25 : vector<4x8x1xf32>
    %c0_17 = arith.constant 0 : index
    %c0_18 = arith.constant 0 : index
    %c0_19 = arith.constant 0 : index
    %27 = vector.load %arg12[%c0_17, %c0_18, %c0_19] : memref<4x8x1xf32, #tpu.memory_space<vmem>>, vector<4x8x1xf32>
    tpu.vector_store %arg12[%c0_17, %c0_18, %c0_19], %26 {strides = array<i32>} : memref<4x8x1xf32, #tpu.memory_space<vmem>>, vector<4x8x1xf32>,
    %c0_20 = arith.constant 0 : index
    %c0_21 = arith.constant 0 : index
    %c0_22 = arith.constant 0 : index
    %28 = vector.load %arg13[%c0_20, %c0_21, %c0_22] : memref<4x8x8xf32, #tpu.memory_space<vmem>>, vector<4x8x8xf32>
    %29 = vector.broadcast %18 : vector<4x8x1xf32> to vector<4x8x8xf32>
    %30 = arith.mulf %29, %28 : vector<4x8x8xf32>
    "tpu.trace_start"() <{level = 10 : i32, message = "hqk,hke->hqe"}> : () -> ()
    %cst_23 = arith.constant dense<0.000000e+00> : vector<4x8x8xf32>
    %31 = tpu.matmul %21, %10, %cst_23 {dimension_numbers = #tpu.dot_dimension_numbers<[2], [1], [1], [2], [0, 0, 0, 1, 1, 2], [0], [0]>} : vector<4x8x8xf32>, vector<4x8x8xf32>, vector<4x8x8xf32> -> vector<4x8x8xf32>
    "tpu.trace_stop"() : () -> ()
    %32 = arith.addf %30, %31 : vector<4x8x8xf32>
    %c0_24 = arith.constant 0 : index
    %c0_25 = arith.constant 0 : index
    %c0_26 = arith.constant 0 : index
    %33 = vector.load %arg13[%c0_24, %c0_25, %c0_26] : memref<4x8x8xf32, #tpu.memory_space<vmem>>, vector<4x8x8xf32>
    tpu.vector_store %arg13[%c0_24, %c0_25, %c0_26], %32 {strides = array<i32>} : memref<4x8x8xf32, #tpu.memory_space<vmem>>, vector<4x8x8xf32>,
    %c0_27 = arith.constant 0 : index
    %c0_28 = arith.constant 0 : index
    %c0_29 = arith.constant 0 : index
    %34 = vector.load %arg11[%c0_27, %c0_28, %c0_29] : memref<4x8x1xf32, #tpu.memory_space<vmem>>, vector<4x8x1xf32>
    tpu.vector_store %arg11[%c0_27, %c0_28, %c0_29], %16 {strides = array<i32>} : memref<4x8x1xf32, #tpu.memory_space<vmem>>, vector<4x8x1xf32>,
    %c0_i32_30 = arith.constant 0 : i32
    %35 = arith.cmpi eq, %arg2, %c0_i32_30 : i32
    %36 = arith.extui %35 : i1 to i32
    %c0_i32_31 = arith.constant 0 : i32
    %37 = arith.cmpi ne, %36, %c0_i32_31 : i32
    scf.if %37 {
      %c0_32 = arith.constant 0 : index
      %c0_33 = arith.constant 0 : index
      %c0_34 = arith.constant 0 : index
      %38 = vector.load %arg13[%c0_32, %c0_33, %c0_34] : memref<4x8x8xf32, #tpu.memory_space<vmem>>, vector<4x8x8xf32>
      %c0_35 = arith.constant 0 : index
      %c0_36 = arith.constant 0 : index
      %c0_37 = arith.constant 0 : index
      %39 = vector.load %arg12[%c0_35, %c0_36, %c0_37] : memref<4x8x1xf32, #tpu.memory_space<vmem>>, vector<4x8x1xf32>
      %40 = tpu.reciprocal %39 {approx = true} : vector<4x8x1xf32> -> vector<4x8x1xf32>
      %41 = vector.broadcast %40 : vector<4x8x1xf32> to vector<4x8x8xf32>
      %42 = arith.mulf %38, %41 : vector<4x8x8xf32>
      %43 = tpu.transpose %42, [1, 0, 2] : vector<4x8x8xf32> -> vector<8x4x8xf32>
      %44 = vector.shape_cast %43 : vector<8x4x8xf32> to vector<8x32xf32>
      %c0_38 = arith.constant 0 : index
      %c0_39 = arith.constant 0 : index
      %45 = vector.load %arg7[%c0_38, %c0_39] : memref<32x32xf32, #tpu.memory_space<vmem>>, vector<32x32xf32>
      %cst_40 = arith.constant dense<0.000000e+00> : vector<8x32xf32>
      %46 = tpu.matmul %44, %45, %cst_40 {dimension_numbers = #tpu.dot_dimension_numbers<[1], [0], [0], [1], [0, 0, 1, 1], [], []>} : vector<8x32xf32>, vector<32x32xf32>, vector<8x32xf32> -> vector<8x32xf32>
      %c0_41 = arith.constant 0 : index
      %c0_42 = arith.constant 0 : index
      %47 = vector.load %arg8[%c0_41, %c0_42] : memref<1x32xf32, #tpu.memory_space<vmem>>, vector<1x32xf32>
      %48 = vector.broadcast %47 : vector<1x32xf32> to vector<8x32xf32>
      %49 = arith.addf %46, %48 : vector<8x32xf32>
      %c0_43 = arith.constant 0 : index
      %c0_44 = arith.constant 0 : index
      %c0_45 = arith.constant 0 : index
      %50 = vector.load %arg9[%c0_43, %c0_44, %c0_45] : memref<1x8x32xf32, #tpu.memory_space<vmem>>, vector<1x8x32xf32>
      %51 = vector.shape_cast %50 : vector<1x8x32xf32> to vector<8x32xf32>
      %52 = vector.shape_cast %49 : vector<8x32xf32> to vector<1x8x32xf32>
      tpu.vector_store %arg9[%c0_43, %c0_44, %c0_45], %52 {strides = array<i32>} : memref<1x8x32xf32, #tpu.memory_space<vmem>>, vector<1x8x32xf32>,
    } else {
    }
    return
  }
  func.func @transform_0(%arg0: i32, %arg1: i32, %arg2: i32) -> (i32, i32, i32) {
    %c0_i32 = arith.constant 0 : i32
    %c0_i32_0 = arith.constant 0 : i32
    return %arg0, %arg1, %c0_i32 : i32, i32, i32
  }
  func.func @transform_1(%arg0: i32, %arg1: i32, %arg2: i32) -> (i32, i32, i32) {
    %c0_i32 = arith.constant 0 : i32
    %c0_i32_0 = arith.constant 0 : i32
    return %arg0, %arg2, %c0_i32 : i32, i32, i32
  }
  func.func @transform_2(%arg0: i32, %arg1: i32, %arg2: i32) -> (i32, i32) {
    %c0_i32 = arith.constant 0 : i32
    %c0_i32_0 = arith.constant 0 : i32
    %c0_i32_1 = arith.constant 0 : i32
    return %c0_i32, %c0_i32_0 : i32, i32
  }
  func.func @transform_3(%arg0: i32, %arg1: i32, %arg2: i32) -> (i32, i32) {
    %c0_i32 = arith.constant 0 : i32
    %c0_i32_0 = arith.constant 0 : i32
    %c0_i32_1 = arith.constant 0 : i32
    return %c0_i32, %c0_i32_0 : i32, i32
  }
  func.func @transform_4(%arg0: i32, %arg1: i32, %arg2: i32) -> (i32, i32) {
    %c0_i32 = arith.constant 0 : i32
    %c0_i32_0 = arith.constant 0 : i32
    %c0_i32_1 = arith.constant 0 : i32
    return %c0_i32, %c0_i32_0 : i32, i32
  }
  func.func @transform_5(%arg0: i32, %arg1: i32, %arg2: i32) -> (i32, i32) {
    %c0_i32 = arith.constant 0 : i32
    %c0_i32_0 = arith.constant 0 : i32
    %c0_i32_1 = arith.constant 0 : i32
    return %c0_i32, %c0_i32_0 : i32, i32
  }
  func.func @transform_6(%arg0: i32, %arg1: i32, %arg2: i32) -> (i32, i32, i32) {
    %c0_i32 = arith.constant 0 : i32
    %c0_i32_0 = arith.constant 0 : i32
    return %arg0, %arg1, %c0_i32 : i32, i32, i32
  }
}

</mosaic_0001>

<bundles_post_ra>
// kernel: tpu_custom_call.1
= control target key start
LH: loop header
LB: loop body
LE: loop exit
PB: predicated region body
PF: predicated region fallthrough
CT: control target
= control target key end

     0   :  { %s3197_s0 = inlined_call_operand.hbm [shape: f32[2,8,32], index: 0, kind: input, shape index: {}]   ;;  %s3198_s1 = inlined_call_operand.hbm [shape: f32[2,8,32], index: 1, kind: input, shape index: {}]   ;;  %s3199_s2 = inlined_call_operand.hbm [shape: f32[32,32], index: 2, kind: input, shape index: {}]   ;;  %s3200_s3 = inlined_call_operand.hbm [shape: f32[32,64], index: 3, kind: input, shape index: {}]   ;;  %s3201_s4 = inlined_call_operand.hbm [shape: f32[32,32], index: 4, kind: input, shape index: {}]   ;;  %s3202_s5 = inlined_call_operand.vmem [shape: f32[1,32], index: 5, kind: input, shape index: {}]   ;;  %s3203_s6 = inlined_call_operand.hbm [shape: f32[2,8,32], index: 6, kind: output, shape index: {}]  }
   0x1   :  { %3206 = sst [smem:[#allocation21_spill]] %s3197_s0 }
   0x2   :  { %3207 = sst [smem:[#allocation22_spill]] %s3199_s2 }
   0x3   :  { %3208 = sst [smem:[#allocation23_spill]] %s3200_s3 }
   0x4   :  { %3209 = sst [smem:[#allocation24_spill]] %s3201_s4 }
   0x5   :  { %11 = vsyncpa [#allocation7], 0 }
   0x6   :  { %13 = vsyncpa [#allocation7 + $0x1], 0 }
   0x7   :  { %14 = vsyncpa [#allocation10], 0 }
   0x8   :  { %16 = vsyncpa [#allocation10 + $0x1], 0 }
   0x9   :  { %17 = vsyncpa [#allocation13], 0 }
   0xa   :  { %18 = vsyncpa [#allocation8], 0 }
   0xb   :  { %20 = vsyncpa [#allocation8 + $0x1], 0  ;;  %s2739_s21 = smov 0   ;;  %s2741_s22 = smov 0  }
   0xc   :  { %s2743_s23 = smov 0   ;;  %s2745_s24 = smov 0  }
   0xd   :  { %s2747_s25 = smov 0   ;;  %s2749_s26 = smov 0  }
   0xe LB: > { %s2770_s27 = sadd.s32 4294967295, %s2678_s26   ;;  %s2157_s28 = sadd.s32 4294967294, %s2678_s26   ;;  %s2678_s26 = sphi %s2749_s26, %s26_s26   ;;  %s2674_s25 = sphi %s2747_s25, %s3232_s25   ;;  %s2670_s24 = sphi %s2745_s24, %s3231_s24   ;;  %s2666_s23 = sphi %s2743_s23, %s3230_s23   ;;  %s2662_s22 = sphi %s2741_s22, %s3229_s22   ;;  %s2658_s21 = sphi %s2739_s21, %s3228_s21  }
   0xf   : > { %p67_p0 = scmp.ne.s32.totalorder %s2662_s22, %s2658_s21  ;;  %p3204_p1 = scmp.eq.s32.totalorder %s2770_s27, 0 }
  0x10   : > { %p211_p3 = scmp.eq.s32.totalorder %s2157_s28, 1  ;;  %p2158_p5 = scmp.ge.s32.totalorder %s2678_s26, 1 }
  0x11   : > { %p2779_p4 = por %p3204_p1, %p67_p0  ;;  %p218_p7 = scmp.lt.s32.totalorder %s2678_s26, 3 }
  0x12   : > { %p2784_p6 = por %p211_p3, %p67_p0  ;;  %s2680_s8 = smov [#allocation11]  }
  0x13   : > { %s3210_s29 = scalar_select %p2779_p4, 1, 0 }
  0x14   : > { %s3211_s30 = scalar_select %p2784_p6, 1, 0 }
  0x15   : > { %p2789_p8 = pnand %p2158_p5, %p218_p7  ;;  %s230_s9 = sshll.u32 %s2680_s8, 4  ;;  %s231_s9 = int_to_ptr.vmem [resolvable:$true] %s230_s9 }
  0x16   : > { %s2681_s11 = smov [#allocation12]   ;;  %s2682_s13 = smov [#allocation14]  }
  0x17   : > { %p2328_p9 = pneg %p2789_p8  ;;  %s243_s12 = sshll.u32 %s2681_s11, 4  ;;  %s244_s12 = int_to_ptr.vmem [resolvable:$true] %s243_s12 }
  0x18   : > { %s256_s14 = sshll.u32 %s2682_s13, 4  ;;  %s2463_s15 = scalar_lea.vmem %s231_s9, 512  ;;  %s257_s14 = int_to_ptr.vmem [resolvable:$true] %s256_s14 }
  0x19   : > { %p2798_p11 = pnand %p2328_p9, %p3204_p1  ;;  %p2464_p13 = scmp.ne.s32.totalorder %s231_s9, %s2463_s15 }
  0x1a   : > { %p2471_p5 = scmp.lt.s32.totalorder %s231_s9, %s231_s9  ;;  %p2472_p7 = scmp.lt.s32.totalorder %s2463_s15, %s2463_s15 }
  0x1b   : > { %p2454_p12 = pneg %p2798_p11 }
  0x1c   : > { %p2473_p9 = por %p2472_p7, %p2471_p5 }
  0x1d   : > { %p2466_p0 = pnand %p2464_p13, %p2454_p12 }
  0x1f   : > { %p2467_p3 = pneg %p2466_p0 }
  0x21   : > { %p2474_p10 = pnand %p2473_p9, %p2467_p3 }
  0x23   : > { %2477 = shalt.err (!%p2474_p10)
}
  0x24   : > { %s2683_s16 = smov 128   ;;  %s2684_s17 = smov 8  }
  0x25   : > { %s3214_s2 = sld [smem:[#allocation22_spill]]  ;;  %s2489_s20 = scalar_lea.vmem %s244_s12, 512 }
  0x26   : > { %p2490_p1 = scmp.ne.s32.totalorder %s244_s12, %s2489_s20  ;;  %p2497_p2 = scmp.lt.s32.totalorder %s244_s12, %s244_s12 }
  0x27   : > { %p2498_p6 = scmp.lt.s32.totalorder %s2489_s20, %s2489_s20 }
  0x28   : > { %p2492_p13 = pnand %p2490_p1, %p2454_p12 }
  0x29   : > { %p2499_p5 = por %p2498_p6, %p2497_p2 }
  0x2a   : > { %p2493_p0 = pneg %p2492_p13 }
  0x2b   : > { %2331 = dma.hbm_to_vmem [thread:$0]  (!%p2798_p11), %s3214_s2, 512, %s231_s9, [#allocation10], %s2683_s16, %s2683_s16, %s2684_s17  }
  0x2c   : > { %p2500_p3 = pnand %p2499_p5, %p2493_p0 }
  0x2e   : > { %2503 = shalt.err (!%p2500_p3)
}
  0x2f   : > { %s3215_s3 = sld [smem:[#allocation23_spill]]  ;;  %s2515_s9 = scalar_lea.vmem %s257_s14, 512 }
  0x30   : > { %p2516_p10 = scmp.ne.s32.totalorder %s257_s14, %s2515_s9  ;;  %p2523_p9 = scmp.lt.s32.totalorder %s257_s14, %s257_s14 }
  0x31   : > { %p2524_p13 = scmp.lt.s32.totalorder %s2515_s9, %s2515_s9 }
  0x32   : > { %p2518_p7 = pnand %p2516_p10, %p2454_p12 }
  0x33   : > { %p2525_p4 = por %p2524_p13, %p2523_p9 }
  0x34   : > { %p2519_p1 = pneg %p2518_p7 }
  0x35   : > { %2334 = dma.hbm_to_vmem [thread:$0]  (!%p2798_p11), %s3215_s3, 512, %s244_s12, [#allocation13], %s2683_s16, %s2683_s16, %s2684_s17  }
  0x36   : > { %p2526_p2 = pnand %p2525_p4, %p2519_p1 }
  0x38   : > { %2529 = shalt.err (!%p2526_p2)
}
  0x39   : > { %s3216_s4 = sld [smem:[#allocation24_spill]]  ;;  %s54_s12 = sadd.s32 1, %s2666_s23 }
  0x3a   : > { %s45_s15 = sadd.s32 1, %s2674_s25  ;;  %p61_p4 = scmp.ne.s32.totalorder %s2666_s23, %s2662_s22 }
  0x3b   : > { %p47_p6 = scmp.ge.s32.totalorder %s45_s15, 2  ;;  %p62_p12 = scmp.eq.s32.totalorder %s2678_s26, 0 }
  0x3c   : > { %p3217_p0 = scmp.eq.s32.totalorder %s2770_s27, 1  ;;  %p2352_p3 = scmp.lt.s32.totalorder %s2678_s26, 2 }
  0x3d   : > { %s3234_s15 = smov (%p47_p6, %s45_s15), 0  ;;  %p63_p10 = por %p62_p12, %p61_p4 }
  0x3e   : > { %p2835_p5 = por %p3217_p0, %p61_p4  ;;  %s273_s18 = sand.u32 1, %s2666_s23  }
  0x3f   : > { %2337 = dma.hbm_to_vmem [thread:$0]  (!%p2798_p11), %s3216_s4, 512, %s257_s14, [#allocation13], %s2683_s16, %s2683_s16, %s2684_s17  }
  0x40   : > { %s49_s19 = ssub.s32 %s2674_s25, %s3234_s15  ;;  %s2163_s14 = sshll.u32 %s273_s18, 3 }
  0x41   : > { %p52_p11 = scmp.eq.s32.totalorder %s49_s19, 0  ;;  %s2164_s16 = sshll.u32 %s2674_s25, 7 }
  0x42   : > { %s3219_s0 = sld [smem:[#allocation21_spill]]  ;;  %s277_s9 = scalar_lea.vmem [#allocation6], %s2163_s14 }
  0x43   : > { %s2847_s17 = scalar_select %p52_p11, %s2666_s23, %s54_s12  }
  0x44   : > { %s285_s11 = sshll.u32 %s277_s9, 4  ;;  %p2854_p7 = pnand %p2352_p3, %p63_p10  ;;  %s286_s11 = int_to_ptr.vmem [resolvable:$true] %s285_s11 }
  0x45   : > { %s2861_s19 = scalar_lea.hbm %s3198_s1, %s2164_s16  ;;  %s292_s12 = sand.u32 1, %s2678_s26  }
  0x46   : > { %s274_s4 = scalar_lea.sflag [#allocation7], %s273_s18  ;;  %p2532_p1 = pneg %p2854_p7 }
  0x47   : > { %s2543_s20 = scalar_lea.vmem %s286_s11, 128  ;;  %s2685_s28 = smov [#allocation6]  }
  0x48   : > { %s283_s8 = scalar_lea.hbm %s3219_s0, %s2164_s16  ;;  %p2544_p9 = scmp.ne.s32.totalorder %s286_s11, %s2543_s20 }
  0x49   : > { %s2548_s9 = sshll.u32 %s2685_s28, 4  ;;  %s2549_s9 = int_to_ptr.vmem [resolvable:$false] %s2548_s9 }
  0x4a   : > { %p2546_p13 = pnand %p2544_p9, %p2532_p1  ;;  %s2550_s0 = scalar_lea.vmem %s2549_s9, 256 }
  0x4b   : > { %p2551_p4 = scmp.lt.s32.totalorder %s286_s11, %s2549_s9  ;;  %p2552_p6 = scmp.lt.s32.totalorder %s2550_s0, %s2543_s20 }
  0x4c   : > { %p2547_p2 = pneg %p2546_p13 }
  0x4d   : > { %p2553_p12 = por %p2552_p6, %p2551_p4 }
  0x4f   : > { %p2554_p0 = pnand %p2553_p12, %p2547_p2 }
  0x51   : > { %2557 = shalt.err (!%p2554_p0)
}
  0x52   : > { %2341 = dma.hbm_to_vmem [thread:$0]  (!%p2854_p7), %s283_s8, 128, %s286_s11, %s274_s4  }
  0x53   : > { %s296_s2 = scalar_lea.vmem [#allocation9], %s2163_s14  ;;  %s293_s18 = scalar_lea.sflag [#allocation10], %s292_s12 }
  0x54   : > { %s304_s3 = sshll.u32 %s296_s2, 4  ;;  %s2686_s28 = smov [#allocation9]   ;;  %s305_s3 = int_to_ptr.vmem [resolvable:$true] %s304_s3 }
  0x55   : > { %s2571_s16 = scalar_lea.vmem %s305_s3, 128  ;;  %s2576_s9 = sshll.u32 %s2686_s28, 4  ;;  %s2577_s9 = int_to_ptr.vmem [resolvable:$false] %s2576_s9 }
  0x56   : > { %p2572_p3 = scmp.ne.s32.totalorder %s305_s3, %s2571_s16  ;;  %s2578_s0 = scalar_lea.vmem %s2577_s9, 256 }
  0x57   : > { %p2579_p9 = scmp.lt.s32.totalorder %s305_s3, %s2577_s9  ;;  %p2580_p13 = scmp.lt.s32.totalorder %s2578_s0, %s2571_s16 }
  0x58   : > { %p2574_p10 = pnand %p2572_p3, %p2532_p1 }
  0x59   : > { %p2581_p2 = por %p2580_p13, %p2579_p9 }
  0x5a   : > { %p2575_p11 = pneg %p2574_p10 }
  0x5c   : > { %p2582_p4 = pnand %p2581_p2, %p2575_p11 }
  0x5e   : > { %2585 = shalt.err (!%p2582_p4)
}
  0x5f   : > { %2344 = dma.hbm_to_vmem [thread:$0]  (!%p2854_p7), %s2861_s19, 128, %s305_s3, %s293_s18  }
  0x60   : > { %313 = sbr.rel (%p2789_p8) target bundleno = 1598 (0x63e), region = 44  ;;  %s2880_s4 = sand.u32 (!%p2789_p8), 1, %s2662_s22  }
  0x61   : > { %s2883_s14 = sshll.u32 (!%p2789_p8), %s2880_s4, 3  ;;  %s316_s8 = scalar_lea.sflag (!%p2789_p8), [#allocation7], %s2880_s4 }
  0x62   : > { %s319_s11 = scalar_lea.vmem (!%p2789_p8), [#allocation6], %s2883_s14  ;;  %p3221_p1 = scmp.ne.s32.totalorder (!%p2789_p8), %s3210_s29, 0 }
  0x65   : > { %2637 = dma.done.wait (%p3221_p1), %s316_s8, 128  }
  0x66   : > { %2639 = vsyncadd (%p3221_p1), %s316_s8, 4294967168  ;;  %s324_s7 = sand.u32 1, %s2770_s27   ;;  %s328_s19 = scalar_lea.vmem [#allocation9], %s2883_s14 }
  0x67   : > { %s325_s13 = scalar_lea.sflag [#allocation10], %s324_s7 }
  0x68   : > { %2641 = dma.done.wait (%p3221_p1), %s325_s13, 128  }
  0x69   : > { %2643 = vsyncadd (%p3221_p1), %s325_s13, 4294967168  ;;  %p3222_p8 = scmp.eq.s32.totalorder %s2770_s27, 0 }
  0x6b   : > { %2645 = dma.done.wait (%p3222_p8), [#allocation10], 512   ;;  %p3223_p7 = pmov %p3222_p8 }
  0x6d   : > { %2647 = vsyncadd (%p3223_p7), [#allocation10], 4294966784  ;;  %p3224_p6 = pmov %p3223_p7 }
  0x6f   : > { %2649 = dma.done.wait (%p3224_p6), [#allocation13], 1024   ;;  %p3225_p12 = pmov %p3224_p6 }
  0x70   : > { %v2687_v0 = vmov 0.0   ;;  %vm2688_vm0 = vmmov 0   ;;  %v382_v1 = vld [vmem:[#allocation11 + $0x18] sm:$0xff]  ;;  %v381_v2 = vld [vmem:[#allocation11 + $0x10] sm:$0xff]  ;;  %v380_v5 = vld [vmem:[#allocation11 + $0x8] sm:$0xff]  ;;  %vm383_vm1 = vcmask 261120   ;;  %v473_v18 = vlaneseq }
  0x71   : > { %2651 = vsyncadd (%p3225_p12), [#allocation13], 4294966272  ;;  %2237 = vmatprep.subr.mxu0 %v2687_v0  ;;  %2248 = vmatprep.subr.mxu1 %v2687_v0  ;;  %v626_v3 = vld [vmem:[#allocation12 + $0x18] sm:$0xff]  ;;  %v625_v4 = vld [vmem:[#allocation12 + $0x10] sm:$0xff]  ;;  %vm604_vm2 = vcmask 64512   ;;  %s2689_s27 = smov 104  }
  0x72   : > { %2245 = vmatprep.mubr.msk.f32.mxu0 %vm2688_vm0, %v2687_v0  ;;  %2256 = vmatprep.mubr.msk.f32.mxu1 %vm2688_vm0, %v2687_v0  ;;  %v624_v6 = vld [vmem:[#allocation12 + $0x8] sm:$0xff]  ;;  %v379_v7 = vld [vmem:[#allocation11] sm:$0xff]  ;;  %v622_v10 = vld [vmem:[%s328_s19] sm:$0xff]  ;;  %618 = vst.msk [vmem:[#allocation5] sm:$0xff] %vm604_vm2, %v2687_v0  ;;  %s2690_s29 = smov 120   ;;  %s2691_s12 = smov 112  }
  0x73   : > { %2238 = vmatpush3.msra.mxu0 %v382_v1  ;;  %2249 = vmatpush3.msra.mxu1 %v626_v3  ;;  %v378_v8 = vld [vmem:[%s319_s11] sm:$0xff]  ;;  %619 = vst.msk [vmem:[#allocation5 + $0x8] sm:$0xff] %vm604_vm2, %v2687_v0  ;;  %620 = vst.msk [vmem:[#allocation5 + $0x10] sm:$0xff] %vm604_vm2, %v2687_v0  ;;  %v2692_v16 = vmov 1983009808   ;;  %v474_v22 = vshrl.u32 %v473_v18, 7 }
  0x74   : > { %2239 = vmatprep.subr.mxu0 %v2687_v0  ;;  %2250 = vmatprep.subr.mxu1 %v2687_v0  ;;  %v623_v9 = vld [vmem:[#allocation12] sm:$0xff]  ;;  %621 = vst.msk [vmem:[#allocation5 + $0x18] sm:$0xff] %vm604_vm2, %v2687_v0  ;;  %v471_v17 = vunpack.c.l.s4 %v2692_v16  ;;  %v2693_v19 = vmov 1934713408   ;;  %vm609_vm3 = vcmask 7168   ;;  %s2696_s20 = smov 96  }
  0x75   : > { %2240 = vmatpush3.msra.mxu0 %v381_v2  ;;  %2251 = vmatpush3.msra.mxu1 %v625_v4  ;;  %v503_v20 = vunpack.c.l.s4 %v2693_v19  ;;  %614 = vst.msk [vmem:[#allocation4] sm:$0xff] %vm609_vm3, %v2687_v0  ;;  %615 = vst.msk [vmem:[#allocation4 + $0x8] sm:$0xff] %vm609_vm3, %v2687_v0  ;;  %s2697_s2 = smov 88   ;;  %s2698_s3 = smov 80   ;;  %vm1917_vm4 = vcmask 130048   ;;  %vm1919_vm5 = vcmask 195584  }
  0x76   : > { %2241 = vmatprep.subr.mxu0 %v2687_v0  ;;  %2252 = vmatprep.subr.mxu1 %v2687_v0  ;;  %v472_v21 = vunpack.c.0.s8 %v471_v17  ;;  %616 = vst.msk [vmem:[#allocation4 + $0x10] sm:$0xff] %vm609_vm3, %v2687_v0  ;;  %617 = vst.msk [vmem:[#allocation4 + $0x18] sm:$0xff] %vm609_vm3, %v2687_v0  ;;  %s2699_s18 = smov 72   ;;  %s2700_s16 = smov 16  }
  0x77   : > { %2242 = vmatpush3.msra.mxu0 %v380_v5  ;;  %2253 = vmatpush3.msra.mxu1 %v624_v6  ;;  %v504_v25 = vunpack.c.0.s8 %v503_v20  ;;  %s2701_s28 = smov 8   ;;  %s2702_s9 = smov 24  }
  0x78   : > { %2243 = vmatprep.subr.mxu0 %v2687_v0  ;;  %2254 = vmatprep.subr.mxu1 %v2687_v0  ;;  %v2942_v26 = vsub.s32 %v472_v21, %v474_v22  ;;  %s2203_s11 = sshll.u32 %s2670_s24, 7  ;;  %s373_s7 = scalar_lea.vmem [#allocation15], %s2883_s14 }
  0x79   : > { %2244 = vmatpush3.msra.mxu0 %v379_v7  ;;  %2255 = vmatpush3.msra.mxu1 %v623_v9  ;;  %v2944_v33 = vsub.s32 %v504_v25, %v474_v22  ;;  %s2021_s13 = sshll.u32 %s373_s7, 4  ;;  %s2703_s24 = smov [#allocation15]   ;;  %s2022_s13 = int_to_ptr.vmem [resolvable:$true] %s2021_s13 }
  0x7a   : > { %2246 = vmatmul.mubr.msk.f32.vlgmr.msra.gmra.mxu0 %vm383_vm1, %v378_v8  ;;  %2257 = vmatmul.mubr.msk.f32.vlgmr.msra.gmra.mxu1 %vm383_vm1, %v622_v10  ;;  %s2590_s14 = sshll.u32 %s2703_s24, 4  ;;  %s2591_s14 = int_to_ptr.vmem [resolvable:$false] %s2590_s14 }
  0x7b   : > { %2259 = vmatprep.subr.mxu1 %v2687_v0  ;;  %2269 = vmatprep.subr.mxu0 %v2687_v0  ;;  %p2593_p11 = scmp.lt.s32.totalorder %s2022_s13, %s2591_s14 }
  0x7c   : > { %2261 = vmatprep.mubr.msk.f32.mxu1 %vm2688_vm0, %v2687_v0  ;;  %2271 = vmatprep.mubr.msk.f32.mxu0 %vm2688_vm0, %v2687_v0 }
 0x13a   : > { %v453_v11 = vpop.f32.mrf.mxu0  ;;  %v2937_v13 = vpop.f32.mrf.mxu1 }
 0x13b   : > { %v457_v12 = vmul.f32 0.35355338, %v453_v11 }
 0x13c   : > { %v2247_v14 = vpop.f32.mrf.mxu0  ;;  %v2258_v15 = vpop.f32.mrf.mxu1 }
 0x13d   : > { %465 = vrot.lane.b32.xlu1 %v457_v12, %s2689_s27  ;;  %459 = vrot.lane.b32.xlu0 %v457_v12, %s2690_s29 }
 0x141   : > { %702 = vrot.lane.b32.xlu1 %v2937_v13, %s2690_s29  ;;  %462 = vrot.lane.b32.xlu0 %v457_v12, %s2691_s12  ;;  %s3154_s29 = scalar_lea.hbm %s3203_s6, %s2203_s11 }
 0x145   : > { %708 = vrot.lane.b32.xlu1 %v2937_v13, %s2689_s27  ;;  %705 = vrot.lane.b32.xlu0 %v2937_v13, %s2691_s12  ;;  %s2007_s12 = scalar_lea.sflag [#allocation8], %s2880_s4 }
 0x1af   : > { %v466_v23 = vpop.permute.xlu1 %465  ;;  %v460_v24 = vpop.permute.xlu0 %459 }
 0x1b0   : > { %v484_v27 = vcombine.low %v460_v24, %v466_v23  ;;  %v485_v28 = vcombine.high %v460_v24, %v466_v23 }
 0x1b2   : > { %v492_v34 = vrot.slane %v484_v27, %v2942_v26  ;;  %v499_v35 = vrot.slane %v485_v28, %v2942_v26 }
 0x1b3   : > { %v703_v29 = vpop.permute.xlu1 %702  ;;  %v463_v30 = vpop.permute.xlu0 %462 }
 0x1b4   : > { %v468_v31 = vcombine.low %v457_v12, %v463_v30  ;;  %v469_v32 = vcombine.high %v457_v12, %v463_v30 }
 0x1b6   : > { %v476_v36 = vrot.slane %v468_v31, %v2942_v26  ;;  %v483_v37 = vrot.slane %v469_v32, %v2942_v26 }
 0x1b7   : > { %v709_v38 = vpop.permute.xlu1 %708  ;;  %v706_v39 = vpop.permute.xlu0 %705 }
 0x1b8   : > { %v500_v40 = vcombine.low %v476_v36, %v492_v34  ;;  %v501_v41 = vcombine.high %v476_v36, %v492_v34  ;;  %v516_v42 = vcombine.low %v483_v37, %v499_v35  ;;  %v517_v43 = vcombine.high %v483_v37, %v499_v35 }
 0x1b9   : > { %v739_v44 = vcombine.low %v703_v29, %v709_v38  ;;  %v740_v45 = vcombine.high %v703_v29, %v709_v38  ;;  %v723_v46 = vcombine.low %v2937_v13, %v706_v39  ;;  %v724_v47 = vcombine.high %v2937_v13, %v706_v39 }
 0x1ba   : > { %v508_v48 = vrot.slane %v500_v40, %v2944_v33  ;;  %v515_v49 = vrot.slane %v501_v41, %v2944_v33  ;;  %v524_v50 = vrot.slane %v516_v42, %v2944_v33  ;;  %v531_v51 = vrot.slane %v517_v43, %v2944_v33 }
 0x1bb   : > { %v747_v52 = vrot.slane %v739_v44, %v2942_v26  ;;  %v754_v53 = vrot.slane %v740_v45, %v2942_v26  ;;  %v731_v54 = vrot.slane %v723_v46, %v2942_v26  ;;  %v738_v55 = vrot.slane %v724_v47, %v2942_v26 }
 0x1bc   : > { %v536_v56 = vcombine.low %v508_v48, %v515_v49  ;;  %v2175_v57 = vcombine.high %v508_v48, %v515_v49  ;;  %v552_v58 = vcombine.low %v524_v50, %v531_v51  ;;  %v2176_v59 = vcombine.high %v524_v50, %v531_v51 }
 0x1bd   : > { %v787_v60 = vcombine.low %v731_v54, %v747_v52  ;;  %v788_v61 = vcombine.high %v731_v54, %v747_v52  ;;  %v803_v62 = vcombine.low %v738_v55, %v754_v53  ;;  %v804_v63 = vcombine.high %v738_v55, %v754_v53 }
 0x1be   : > { %v543_v1 = vrot.slane %v536_v56, %v2942_v26  ;;  %v551_v2 = vrot.slane %v2175_v57, %v2942_v26  ;;  %v559_v3 = vrot.slane %v552_v58, %v2942_v26  ;;  %v567_v4 = vrot.slane %v2176_v59, %v2942_v26 }
 0x1bf   : > { %v795_v5 = vrot.slane %v787_v60, %v2944_v33  ;;  %v802_v6 = vrot.slane %v788_v61, %v2944_v33  ;;  %v811_v7 = vrot.slane %v803_v62, %v2944_v33  ;;  %v818_v8 = vrot.slane %v804_v63, %v2944_v33 }
 0x1c0   : > { %v568_v9 = vcombine.low %v543_v1, %v551_v2  ;;  %v569_v10 = vcombine.high %v543_v1, %v551_v2  ;;  %v584_v11 = vcombine.low %v559_v3, %v567_v4  ;;  %v585_v12 = vcombine.high %v559_v3, %v567_v4 }
 0x1c1   : > { %v2178_v14 = vcombine.low %v795_v5, %v802_v6  ;;  %v2180_v15 = vcombine.high %v795_v5, %v802_v6  ;;  %v2182_v16 = vcombine.low %v811_v7, %v818_v8  ;;  %v2184_v17 = vcombine.high %v811_v7, %v818_v8 }
 0x1c2   : > { %v576_v18 = vrot.slane %v568_v9, %v2944_v33  ;;  %v583_v19 = vrot.slane %v569_v10, %v2944_v33  ;;  %v592_v20 = vrot.slane %v584_v11, %v2944_v33  ;;  %v599_v21 = vrot.slane %v585_v12, %v2944_v33 }
 0x1c3   : > { %v867_v22 = vrot.slane %v2178_v14, %v2942_v26  ;;  %v883_v23 = vrot.slane %v2180_v15, %v2942_v26  ;;  %v899_v24 = vrot.slane %v2182_v16, %v2942_v26  ;;  %v915_v25 = vrot.slane %v2184_v17, %v2942_v26 }
 0x1c4   : > { %v600_v27 = vcombine.low %v576_v18, %v592_v20  ;;  %v601_v28 = vcombine.high %v576_v18, %v592_v20  ;;  %v602_v29 = vcombine.low %v583_v19, %v599_v21  ;;  %v603_v30 = vcombine.high %v583_v19, %v599_v21 }
 0x1c5   : > { %v923_v31 = vcombine.low %v867_v22, %v883_v23  ;;  %v924_v32 = vcombine.high %v867_v22, %v883_v23  ;;  %v955_v34 = vcombine.low %v899_v24, %v915_v25  ;;  %v956_v35 = vcombine.high %v899_v24, %v915_v25 }
 0x1c6   : > { %605 = vst.msk [vmem:[#allocation2] sm:$0xff] %vm604_vm2, %v600_v27  ;;  %606 = vst.msk [vmem:[#allocation2 + $0x8] sm:$0xff] %vm604_vm2, %v601_v28  ;;  %v2694_v48 = vmov -inf   ;;  %v2695_v61 = vmov 0  }
 0x1c7   : > { %607 = vst.msk [vmem:[#allocation2 + $0x10] sm:$0xff] %vm604_vm2, %v602_v29  ;;  %608 = vst.msk [vmem:[#allocation2 + $0x18] sm:$0xff] %vm604_vm2, %v603_v30  ;;  %v931_v36 = vrot.slane %v923_v31, %v2944_v33  ;;  %v963_v37 = vrot.slane %v955_v34, %v2944_v33  ;;  %v938_v38 = vrot.slane %v924_v32, %v2944_v33  ;;  %2426 = vset.pattern.permute.xlu1 %v2695_v61 }
 0x1c8   : > { %v970_v39 = vrot.slane %v956_v35, %v2944_v33  ;;  %610 = vst.msk [vmem:[#allocation3] sm:$0xff] %vm609_vm3, %v2694_v48  ;;  %611 = vst.msk [vmem:[#allocation3 + $0x8] sm:$0xff] %vm609_vm3, %v2694_v48  ;;  %2427 = vset.pattern.permute.xlu0 %v2695_v61 }
 0x1c9   : > { %v987_v40 = vcombine.low %v931_v36, %v963_v37  ;;  %v988_v43 = vcombine.high %v931_v36, %v963_v37  ;;  %612 = vst.msk [vmem:[#allocation3 + $0x10] sm:$0xff] %vm609_vm3, %v2694_v48  ;;  %613 = vst.msk [vmem:[#allocation3 + $0x18] sm:$0xff] %vm609_vm3, %v2694_v48 }
 0x1ca   : > { %v989_v41 = vcombine.low %v938_v38, %v970_v39  ;;  %v990_v46 = vcombine.high %v938_v38, %v970_v39 }
 0x1cb   : > { %2260 = vmatpush3.xpose.msk.msra.mxu1 %vm604_vm2, %v987_v40 }
 0x1cc   : > { %2270 = vmatpush3.xpose.msk.msra.mxu0 %vm604_vm2, %v989_v41  ;;  %2264 = vmatprep.subr.mxu1 %v2687_v0 }
 0x1cd   : > { %2279 = vmatprep.subr.mxu0 %v2687_v0  ;;  %v995_v42 = vld [vmem:[#allocation2] sm:$0xff]  ;;  %v996_v45 = vld [vmem:[#allocation2 + $0x8] sm:$0xff] }
 0x1ce   : > { %v997_v44 = vld [vmem:[#allocation2 + $0x10] sm:$0xff]  ;;  %2262 = vmatmul.mubr.msk.f32.vlgmr.msra.gmra.mxu1 %vm604_vm2, %v995_v42  ;;  %v998_v47 = vld [vmem:[#allocation2 + $0x18] sm:$0xff] }
 0x1cf   : > { %2272 = vmatmul.mubr.msk.f32.vlgmr.msra.gmra.mxu0 %vm604_vm2, %v997_v44  ;;  %2265 = vmatpush3.xpose.msk.msra.mxu1 %vm604_vm2, %v988_v43  ;;  %v3026_v62 = vld [vmem:[#allocation3] sm:$0xff]  ;;  %v3031_v2 = vld [vmem:[#allocation3 + $0x8] sm:$0xff] }
 0x1d0   : > { %2266 = vmatprep.mubr.msk.f32.mxu1 %vm2688_vm0, %v2687_v0  ;;  %2274 = vmatprep.subr.mxu1 %v2687_v0  ;;  %v3033_v3 = vld [vmem:[#allocation3 + $0x10] sm:$0xff]  ;;  %v3046_v9 = vld [vmem:[#allocation3 + $0x18] sm:$0xff] }
 0x1d1   : > { %2281 = vmatprep.mubr.msk.f32.mxu0 %vm2688_vm0, %v2687_v0 }
 0x1d2   : > { %2267 = vmatmul.mubr.msk.f32.vlgmr.msra.gmra.mxu1 %vm604_vm2, %v996_v45 }
 0x1d3   : > { %2275 = vmatpush3.xpose.msk.msra.mxu1 %vm604_vm2, %v990_v46  ;;  %2276 = vmatprep.mubr.msk.f32.mxu1 %vm2688_vm0, %v2687_v0 }
 0x1d4   : > { %2284 = vmatprep.subr.mxu1 %v2687_v0 }
 0x1d6   : > { %2277 = vmatmul.mubr.msk.f32.vlgmr.msra.gmra.mxu1 %vm604_vm2, %v998_v47 }
 0x1d7   : > { %2286 = vmatprep.mubr.msk.f32.mxu1 %vm2688_vm0, %v2687_v0 }
 0x28e   : > { %v1072_v49 = vpop.f32.mrf.mxu1 }
 0x28f   : > { %v3016_v50 = vpop.f32.mrf.mxu0  ;;  %v1308_v51 = vsel %vm604_vm2, %v1072_v49, -inf }
 0x290   : > { %1309 = vmax.xlane.f32.xlu0 %v1308_v51  ;;  %v2263_v52 = vpop.f32.mrf.mxu1  ;;  %v1314_v56 = vsel %vm604_vm2, %v3016_v50, -inf }
 0x291   : > { %v2273_v53 = vpop.f32.mrf.mxu0 }
 0x292   : > { %v1148_v54 = vpop.f32.mrf.mxu1 }
 0x293   : > { %v1311_v55 = vsel %vm604_vm2, %v1148_v54, -inf }
 0x294   : > { %1312 = vmax.xlane.f32.xlu1 %v1311_v55  ;;  %v2268_v57 = vpop.f32.mrf.mxu1  ;;  %1315 = vmax.xlane.f32.xlu0 %v1314_v56 }
 0x296   : > { %v3022_v58 = vpop.f32.mrf.mxu1 }
 0x297   : > { %v1317_v59 = vsel %vm604_vm2, %v3022_v58, -inf }
 0x298   : > { %v2278_v60 = vpop.f32.mrf.mxu1  ;;  %1318 = vmax.xlane.f32.xlu0 %v1317_v59 }
 0x319   : > { %v1310_v63 = vpop.xlane.xlu0 %1309 }
 0x31a   : > { %v3029_v1 = vmax.f32 %v3026_v62, %v1310_v63 }
 0x31c   : > { %v1324_v4 = vsub.f32 %v3026_v62, %v3029_v1  ;;  %1725 = vst.msk [vmem:[#allocation3] sm:$0xff] %vm609_vm3, %v3029_v1  ;;  %1338 = vperm.xlu1 %2426, %v3029_v1  }
 0x31d   : > { %v1313_v5 = vpop.xlane.xlu1 %1312  ;;  %v1316_v6 = vpop.xlane.xlu0 %1315 }
 0x31e   : > { %v3041_v7 = vmax.f32 %v3031_v2, %v1313_v5  ;;  %v3044_v8 = vmax.f32 %v3033_v3, %v1316_v6 }
 0x320   : > { %v1325_v10 = vsub.f32 %v3031_v2, %v3041_v7  ;;  %1726 = vst.msk [vmem:[#allocation3 + $0x8] sm:$0xff] %vm609_vm3, %v3041_v7  ;;  %v1326_v11 = vsub.f32 %v3033_v3, %v3044_v8  ;;  %1727 = vst.msk [vmem:[#allocation3 + $0x10] sm:$0xff] %vm609_vm3, %v3044_v8  ;;  %711 = vrot.lane.b32.xlu1 %v2937_v13, %s2696_s20  ;;  %1343 = vperm.xlu0 %2427, %v3041_v7   ;;  %s2586_s20 = scalar_lea.vmem %s2022_s13, 128 }
 0x321   : > { %v1319_v12 = vpop.xlane.xlu0 %1318  ;;  %p2587_p0 = scmp.ne.s32.totalorder %s2022_s13, %s2586_s20 }
 0x322   : > { %v3059_v14 = vmax.f32 %v3046_v9, %v1319_v12 }
 0x323   : > { %p2588_p3 = pnand %p2587_p0, %p2835_p5 }
 0x324   : > { %v1327_v15 = vsub.f32 %v3046_v9, %v3059_v14  ;;  %1728 = vst.msk [vmem:[#allocation3 + $0x18] sm:$0xff] %vm609_vm3, %v3059_v14  ;;  %714 = vrot.lane.b32.xlu1 %v2937_v13, %s2697_s2  ;;  %v1369_v9 = vld [vmem:[#allocation4 + $0x8] sm:$0xff]  ;;  %s2592_s2 = scalar_lea.vmem %s2591_s14, 256 }
 0x325   : > { %p2589_p10 = pneg %p2588_p3  ;;  %p2594_p9 = scmp.lt.s32.totalorder %s2592_s2, %s2586_s20 }
 0x326   : > { %v1334_v1 = vmul.f32 1.442695, %v1327_v15 }
 0x327   : > { %p2595_p13 = por %p2594_p9, %p2593_p11 }
 0x328   : > { %717 = vrot.lane.b32.xlu1 %v2937_v13, %s2698_s3 }
 0x329   : > { %p2596_p2 = pnand %p2595_p13, %p2589_p10 }
 0x32c   : > { %720 = vrot.lane.b32.xlu1 %v2937_v13, %s2699_s18 }
 0x330   : > { %1348 = vperm.xlu1 %2426, %v3044_v8  }
 0x334   : > { %1353 = vperm.xlu1 %2426, %v3059_v14  }
 0x397   : > { %v1339_v16 = vpop.permute.xlu1 %1338 }
 0x398   : > { %v1356_v17 = vsub.f32 %v1072_v49, %v1339_v16 }
 0x39a   : > { %v1360_v18 = vmul.f32 1.442695, %v1356_v17 }
 0x39b   : > { %v712_v19 = vpop.permute.xlu1 %711  ;;  %v1344_v20 = vpop.permute.xlu0 %1343 }
 0x39c   : > { %2428 = vpow2.f32 %v1360_v18  ;;  %v1357_v21 = vsub.f32 %v1148_v54, %v1344_v20 }
 0x39e   : > { %v1362_v22 = vmul.f32 1.442695, %v1357_v21 }
 0x39f   : > { %v715_v23 = vpop.permute.xlu1 %714 }
 0x3a0   : > { %2430 = vpow2.f32 %v1362_v22 }
 0x3a3   : > { %v718_v24 = vpop.permute.xlu1 %717 }
 0x3a4   : > { %v755_v25 = vcombine.low %v712_v19, %v718_v24  ;;  %v756_v27 = vcombine.high %v712_v19, %v718_v24  ;;  %v1328_v24 = vmul.f32 1.442695, %v1324_v4  ;;  %v1330_v4 = vmul.f32 1.442695, %v1325_v10 }
 0x3a6   : > { %v763_v31 = vrot.slane %v755_v25, %v2942_v26  ;;  %v770_v32 = vrot.slane %v756_v27, %v2942_v26 }
 0x3a7   : > { %v721_v28 = vpop.permute.xlu1 %720 }
 0x3a8   : > { %v771_v29 = vcombine.low %v715_v23, %v721_v28  ;;  %v772_v13 = vcombine.high %v715_v23, %v721_v28  ;;  %v1332_v28 = vmul.f32 1.442695, %v1326_v11 }
 0x3a9   : > { %v2429_v30 = vpop.eup %2428 }
 0x3aa   : > { %v779_v34 = vrot.slane %v771_v29, %v2942_v26  ;;  %v786_v35 = vrot.slane %v772_v13, %v2942_v26  ;;  %v1376_v36 = vsel %vm604_vm2, %v2429_v30, 0.0  ;;  %v1368_v13 = vld [vmem:[#allocation4] sm:$0xff] }
 0x3ab   : > { %v1349_v37 = vpop.permute.xlu1 %1348  ;;  %1377 = vadd.xlane.f32.xlu1 %v1376_v36 }
 0x3ac   : > { %v819_v38 = vcombine.low %v763_v31, %v779_v34  ;;  %v820_v39 = vcombine.high %v763_v31, %v779_v34  ;;  %v835_v40 = vcombine.low %v770_v32, %v786_v35  ;;  %v836_v41 = vcombine.high %v770_v32, %v786_v35  ;;  %v1370_v34 = vld [vmem:[#allocation4 + $0x10] sm:$0xff] }
 0x3ad   : > { %v2431_v42 = vpop.eup %2430  ;;  %v1358_v43 = vsub.f32 %v3016_v50, %v1349_v37  ;;  %v1371_v37 = vld [vmem:[#allocation4 + $0x18] sm:$0xff] }
 0x3ae   : > { %v827_v44 = vrot.slane %v819_v38, %v2944_v33  ;;  %v834_v45 = vrot.slane %v820_v39, %v2944_v33  ;;  %v843_v46 = vrot.slane %v835_v40, %v2944_v33  ;;  %v850_v47 = vrot.slane %v836_v41, %v2944_v33 }
 0x3af   : > { %v1364_v48 = vmul.f32 1.442695, %v1358_v43  ;;  %v1354_v49 = vpop.permute.xlu1 %1353  ;;  %v1379_v51 = vsel %vm604_vm2, %v2431_v42, 0.0 }
 0x3b0   : > { %v2179_v52 = vcombine.low %v827_v44, %v834_v45  ;;  %v2181_v53 = vcombine.high %v827_v44, %v834_v45  ;;  %v2183_v54 = vcombine.low %v843_v46, %v850_v47  ;;  %v2185_v55 = vcombine.high %v843_v46, %v850_v47  ;;  %1380 = vadd.xlane.f32.xlu0 %v1379_v51  ;;  %v1398_v51 = vld [vmem:[#allocation5 + $0x8] sm:$0xff] }
 0x3b1   : > { %2432 = vpow2.f32 %v1364_v48  ;;  %v1359_v50 = vsub.f32 %v3022_v58, %v1354_v49  ;;  %v1397_v49 = vld [vmem:[#allocation5] sm:$0xff] }
 0x3b2   : > { %v874_v56 = vrot.slane %v2179_v52, %v2942_v26  ;;  %v890_v57 = vrot.slane %v2181_v53, %v2942_v26  ;;  %v906_v59 = vrot.slane %v2183_v54, %v2942_v26  ;;  %v922_v60 = vrot.slane %v2185_v55, %v2942_v26 }
 0x3b3   : > { %v1366_v61 = vmul.f32 1.442695, %v1359_v50  ;;  %v1924_v50 = vld [vmem:[#allocation14 + $0x18] sm:$0xff] }
 0x3b4   : > { %v939_v63 = vcombine.low %v874_v56, %v890_v57  ;;  %v971_v5 = vcombine.low %v906_v59, %v922_v60  ;;  %v940_v6 = vcombine.high %v874_v56, %v890_v57  ;;  %v972_v12 = vcombine.high %v906_v59, %v922_v60  ;;  %v1399_v56 = vld [vmem:[#allocation5 + $0x10] sm:$0xff] }
 0x3b5   : > { %2434 = vpow2.f32 %v1366_v61 }
 0x3b6   : > { %v947_v16 = vrot.slane %v939_v63, %v2944_v33  ;;  %v979_v17 = vrot.slane %v971_v5, %v2944_v33  ;;  %v954_v58 = vrot.slane %v940_v6, %v2944_v33  ;;  %v986_v18 = vrot.slane %v972_v12, %v2944_v33  ;;  %v1400_v12 = vld [vmem:[#allocation5 + $0x18] sm:$0xff] }
 0x3b7   : > { %2436 = vpow2.f32 %v1328_v24 }
 0x3b8   : > { %v991_v19 = vcombine.low %v947_v16, %v979_v17  ;;  %v992_v20 = vcombine.high %v947_v16, %v979_v17  ;;  %v993_v21 = vcombine.low %v954_v58, %v986_v18  ;;  %v994_v22 = vcombine.high %v954_v58, %v986_v18 }
 0x3b9   : > { %2438 = vpow2.f32 %v1332_v28 }
 0x3ba   : > { %2280 = vmatpush3.msra.mxu0 %v991_v19  ;;  %2285 = vmatpush3.msra.mxu1 %v992_v20  ;;  %2440 = vpow2.f32 %v1334_v1 }
 0x3bb   : > { %2282 = vmatmul.mubr.msk.f32.vlgmr.msra.gmra.mxu0 %vm604_vm2, %v2429_v30  ;;  %2287 = vmatmul.mubr.msk.f32.vlgmr.msra.gmra.mxu1 %vm604_vm2, %v2431_v42  ;;  %2442 = vpow2.f32 %v1330_v4 }
 0x3bc   : > { %2289 = vmatprep.subr.mxu0 %v2687_v0  ;;  %2294 = vmatprep.subr.mxu1 %v2687_v0 }
 0x3bd   : > { %2290 = vmatpush3.msra.mxu0 %v993_v21  ;;  %2295 = vmatpush3.msra.mxu1 %v994_v22 }
 0x3be   : > { %v2433_v23 = vpop.eup %2432  ;;  %2291 = vmatprep.mubr.msk.f32.mxu0 %vm2688_vm0, %v2687_v0  ;;  %2296 = vmatprep.mubr.msk.f32.mxu1 %vm2688_vm0, %v2687_v0 }
 0x3bf   : > { %2292 = vmatmul.mubr.msk.f32.vlgmr.msra.gmra.mxu0 %vm604_vm2, %v2433_v23  ;;  %v1382_v25 = vsel %vm604_vm2, %v2433_v23, 0.0  ;;  %2299 = vmatprep.subr.mxu0 %v2687_v0 }
 0x3c0   : > { %1383 = vadd.xlane.f32.xlu1 %v1382_v25  ;;  %2307 = vmatprep.mubr.msk.f32.mxu0 %vm2688_vm0, %v2687_v0 }
 0x3c1   : > { %2300 = vmatpush3.msra.mxu0 %v1924_v50 }
 0x3c2   : > { %v2435_v27 = vpop.eup %2434  ;;  %2301 = vmatprep.subr.mxu0 %v2687_v0 }
 0x3c3   : > { %2297 = vmatmul.mubr.msk.f32.vlgmr.msra.gmra.mxu1 %vm604_vm2, %v2435_v27  ;;  %v1385_v62 = vsel %vm604_vm2, %v2435_v27, 0.0 }
 0x3c4   : > { %1386 = vadd.xlane.f32.xlu0 %v1385_v62  ;;  %v2437_v29 = vpop.eup %2436 }
 0x3c5   : > { %v1372_v30 = vmul.f32 %v2437_v29, %v1368_v13 }
 0x3c6   : > { %v2439_v3 = vpop.eup %2438 }
 0x3c7   : > { %v2441_v8 = vpop.eup %2440  ;;  %v1374_v35 = vmul.f32 %v2439_v3, %v1370_v34 }
 0x3c8   : > { %v2443_v11 = vpop.eup %2442  ;;  %v1375_v40 = vmul.f32 %v2441_v8, %v1371_v37  ;;  %v1922_v37 = vld [vmem:[#allocation14 + $0x8] sm:$0xff] }
 0x3c9   : > { %v1373_v14 = vmul.f32 %v2443_v11, %v1369_v9 }
 0x3d1   : > { %1403 = vperm.xlu1 %2426, %v2437_v29  }
 0x3d5   : > { %1413 = vperm.xlu1 %2426, %v2439_v3  }
 0x3d9   : > { %1418 = vperm.xlu1 %2426, %v2441_v8  }
 0x3da   : > { %1408 = vperm.xlu0 %2427, %v2443_v11  }
 0x434   : > { %v1378_v31 = vpop.xlane.xlu1 %1377 }
 0x435   : > { %v1388_v32 = vadd.f32 %v1378_v31, %v1372_v30 }
 0x437   : > { %1393 = vst.msk [vmem:[#allocation4] sm:$0xff] %vm609_vm3, %v1388_v32 }
 0x439   : > { %v1381_v2 = vpop.xlane.xlu0 %1380 }
 0x43a   : > { %v1389_v7 = vadd.f32 %v1381_v2, %v1373_v14 }
 0x43c   : > { %1394 = vst.msk [vmem:[#allocation4 + $0x8] sm:$0xff] %vm609_vm3, %v1389_v7 }
 0x43e   : > { %v1736_v10 = vld [vmem:[#allocation4] sm:$0xff] }
 0x43f   : > { %2444 = vrcp.f32 %v1736_v10 }
 0x443   : > { %v1737_v15 = vld [vmem:[#allocation4 + $0x8] sm:$0xff] }
 0x444   : > { %2446 = vrcp.f32 %v1737_v15 }
 0x449   : > { %v1384_v36 = vpop.xlane.xlu1 %1383 }
 0x44a   : > { %v1390_v38 = vadd.f32 %v1384_v36, %v1374_v35  ;;  %v1923_v36 = vld [vmem:[#allocation14 + $0x10] sm:$0xff] }
 0x44b   : > { %2302 = vmatpush3.msra.mxu0 %v1923_v36 }
 0x44c   : > { %v2445_v39 = vpop.eup %2444  ;;  %1395 = vst.msk [vmem:[#allocation4 + $0x10] sm:$0xff] %vm609_vm3, %v1390_v38  ;;  %2303 = vmatprep.subr.mxu0 %v2687_v0 }
 0x44d   : > { %v1387_v41 = vpop.xlane.xlu0 %1386  ;;  %1746 = vperm.xlu0 %2427, %v2445_v39   ;;  %v1404_v48 = vpop.permute.xlu1 %1403  ;;  %2304 = vmatpush3.msra.mxu0 %v1922_v37 }
 0x44e   : > { %v1391_v42 = vadd.f32 %v1387_v41, %v1375_v40  ;;  %v1421_v54 = vmul.f32 %v1404_v48, %v1397_v49  ;;  %2305 = vmatprep.subr.mxu0 %v2687_v0 }
 0x450   : > { %1396 = vst.msk [vmem:[#allocation4 + $0x18] sm:$0xff] %vm609_vm3, %v1391_v42 }
 0x451   : > { %v2447_v43 = vpop.eup %2446  ;;  %v1414_v53 = vpop.permute.xlu1 %1413 }
 0x452   : > { %1751 = vperm.xlu1 %2426, %v2447_v43   ;;  %v1423_v6 = vmul.f32 %v1414_v53, %v1399_v56 }
 0x453   : > { %v1738_v44 = vld [vmem:[#allocation4 + $0x10] sm:$0xff] }
 0x454   : > { %2448 = vrcp.f32 %v1738_v44 }
 0x455   : > { %v1409_v52 = vpop.permute.xlu0 %1408  ;;  %v1419_v16 = vpop.permute.xlu1 %1418 }
 0x456   : > { %v1422_v55 = vmul.f32 %v1409_v52, %v1398_v51  ;;  %v1424_v19 = vmul.f32 %v1419_v16, %v1400_v12 }
 0x457   : > { %v1739_v45 = vld [vmem:[#allocation4 + $0x18] sm:$0xff] }
 0x458   : > { %2450 = vrcp.f32 %v1739_v45 }
 0x461   : > { %v2449_v46 = vpop.eup %2448 }
 0x462   : > { %1756 = vperm.xlu0 %2427, %v2449_v46   ;;  %v1921_v46 = vld [vmem:[#allocation14] sm:$0xff] }
 0x463   : > { %2306 = vmatpush3.msra.mxu0 %v1921_v46 }
 0x465   : > { %v2451_v47 = vpop.eup %2450 }
 0x466   : > { %1761 = vperm.xlu1 %2426, %v2451_v47  }
 0x47b   : > { %v1494_v57 = vpop.f32.mrf.mxu0  ;;  %v1567_v59 = vpop.f32.mrf.mxu1 }
 0x47c   : > { %v1717_v60 = vadd.f32 %v1494_v57, %v1421_v54  ;;  %v1718_v61 = vadd.f32 %v1567_v59, %v1422_v55 }
 0x47d   : > { %v2283_v63 = vpop.f32.mrf.mxu0  ;;  %v2288_v5 = vpop.f32.mrf.mxu1 }
 0x47e   : > { %1721 = vst.msk [vmem:[#allocation5] sm:$0xff] %vm604_vm2, %v1717_v60  ;;  %1722 = vst.msk [vmem:[#allocation5 + $0x8] sm:$0xff] %vm604_vm2, %v1718_v61 }
 0x47f   : > { %v1640_v17 = vpop.f32.mrf.mxu0 }
 0x480   : > { %v1719_v58 = vadd.f32 %v1640_v17, %v1423_v6  ;;  %v2200_v17 = vld [vmem:[%s3202_s5] ss:$0 sm:$0xff] }
 0x481   : > { %v2293_v18 = vpop.f32.mrf.mxu0 }
 0x482   : > { %1723 = vst.msk [vmem:[#allocation5 + $0x10] sm:$0xff] %vm604_vm2, %v1719_v58 }
 0x483   : > { %v1713_v20 = vpop.f32.mrf.mxu1 }
 0x484   : > { %v1720_v21 = vadd.f32 %v1713_v20, %v1424_v19 }
 0x485   : > { %v2298_v22 = vpop.f32.mrf.mxu1  ;;  %v1732_v62 = vld [vmem:[#allocation5] sm:$0xff]  ;;  %v1733_v4 = vld [vmem:[#allocation5 + $0x8] sm:$0xff] }
 0x486   : > { %1724 = vst.msk [vmem:[#allocation5 + $0x18] sm:$0xff] %vm604_vm2, %v1720_v21 }
 0x489   : > { %v1734_v27 = vld [vmem:[#allocation5 + $0x10] sm:$0xff] }
 0x48d   : > { %v1735_v29 = vld [vmem:[#allocation5 + $0x18] sm:$0xff] }
 0x4c8   : > { %v1747_v23 = vpop.permute.xlu0 %1746 }
 0x4c9   : > { %v1764_v1 = vmul.f32 %v1747_v23, %v1732_v62 }
 0x4cd   : > { %v1752_v24 = vpop.permute.xlu1 %1751 }
 0x4ce   : > { %v1765_v8 = vmul.f32 %v1752_v24, %v1733_v4 }
 0x4dd   : > { %v1757_v25 = vpop.permute.xlu0 %1756 }
 0x4de   : > { %v1766_v28 = vmul.f32 %v1757_v25, %v1734_v27 }
 0x4e0   : > { %v1768_v11 = vcombine.low %v1764_v1, %v1766_v28  ;;  %v1769_v13 = vcombine.high %v1764_v1, %v1766_v28 }
 0x4e1   : > { %v1762_v3 = vpop.permute.xlu1 %1761 }
 0x4e2   : > { %v1767_v30 = vmul.f32 %v1762_v3, %v1735_v29  ;;  %v1776_v9 = vrot.slane %v1768_v11, %v2942_v26  ;;  %v1783_v14 = vrot.slane %v1769_v13, %v2942_v26 }
 0x4e4   : > { %v1784_v31 = vcombine.low %v1765_v8, %v1767_v30  ;;  %v1785_v32 = vcombine.high %v1765_v8, %v1767_v30 }
 0x4e6   : > { %v1792_v2 = vrot.slane %v1784_v31, %v2942_v26  ;;  %v1799_v7 = vrot.slane %v1785_v32, %v2942_v26 }
 0x4e8   : > { %v1800_v10 = vcombine.low %v1776_v9, %v1792_v2  ;;  %v1801_v15 = vcombine.high %v1776_v9, %v1792_v2  ;;  %v1816_v34 = vcombine.low %v1783_v14, %v1799_v7  ;;  %v1817_v35 = vcombine.high %v1783_v14, %v1799_v7 }
 0x4ea   : > { %v1808_v38 = vrot.slane %v1800_v10, %v2944_v33  ;;  %v1815_v39 = vrot.slane %v1801_v15, %v2944_v33  ;;  %v1824_v40 = vrot.slane %v1816_v34, %v2944_v33  ;;  %v1831_v41 = vrot.slane %v1817_v35, %v2944_v33 }
 0x4ec   : > { %v1836_v42 = vcombine.low %v1808_v38, %v1815_v39  ;;  %v2198_v43 = vcombine.high %v1808_v38, %v1815_v39  ;;  %v1852_v44 = vcombine.low %v1824_v40, %v1831_v41  ;;  %v2199_v45 = vcombine.high %v1824_v40, %v1831_v41 }
 0x4ee   : > { %v1843_v47 = vrot.slane %v1836_v42, %v2942_v26  ;;  %v1851_v48 = vrot.slane %v2198_v43, %v2942_v26  ;;  %v1859_v49 = vrot.slane %v1852_v44, %v2942_v26  ;;  %v1867_v51 = vrot.slane %v2199_v45, %v2942_v26 }
 0x4f0   : > { %v1869_v52 = vcombine.high %v1843_v47, %v1851_v48  ;;  %v1885_v53 = vcombine.high %v1859_v49, %v1867_v51  ;;  %v1868_v54 = vcombine.low %v1843_v47, %v1851_v48  ;;  %v1884_v55 = vcombine.low %v1859_v49, %v1867_v51 }
 0x4f2   : > { %v1883_v50 = vrot.slane %v1869_v52, %v2944_v33  ;;  %v1899_v56 = vrot.slane %v1885_v53, %v2944_v33  ;;  %v1876_v0 = vrot.slane %v1868_v54, %v2944_v33  ;;  %v1892_v57 = vrot.slane %v1884_v55, %v2944_v33 }
 0x4f4   : > { %v1902_v59 = vcombine.low %v1883_v50, %v1899_v56  ;;  %v1901_v60 = vcombine.high %v1876_v0, %v1892_v57  ;;  %v1900_v61 = vcombine.low %v1876_v0, %v1892_v57  ;;  %v1903_v26 = vcombine.high %v1883_v50, %v1899_v56 }
 0x4f6   : > { %1909 = vrot.lane.b32.xlu1 %v1902_v59, %s2700_s16  ;;  %1905 = vrot.lane.b32.xlu0 %v1901_v60, %s2701_s28 }
 0x4fa   : > { %1913 = vrot.lane.b32.xlu0 %v1903_v26, %s2702_s9 }
 0x568   : > { %v1906_v63 = vpop.permute.xlu0 %1905  ;;  %v1910_v5 = vpop.permute.xlu1 %1909 }
 0x569   : > { %v1916_v6 = vsel %vm604_vm2, %v1900_v61, %v1906_v63 }
 0x56a   : > { %v1918_v12 = vsel %vm1917_vm4, %v1916_v6, %v1910_v5 }
 0x56c   : > { %v1914_v33 = vpop.permute.xlu0 %1913 }
 0x56d   : > { %v1920_v16 = vsel %vm1919_vm5, %v1918_v12, %v1914_v33 }
 0x56e   : > { %2308 = vmatmul.mubr.msk.f32.vlgmr.msra.gmra.mxu0 %vm383_vm1, %v1920_v16 }
 0x62e   : > { %v2001_v58 = vpop.f32.mrf.mxu0 }
 0x62f   : > { %v2002_v18 = vadd.f32 %v2200_v17, %v2001_v58 }
 0x630   : > { %v2309_v19 = vpop.f32.mrf.mxu0 }
 0x631   : > { %2005 = vst.msk [vmem:[%s373_s7] sm:$0xff] %vm383_vm1, %v2002_v18 }
 0x632   : > { %2599 = shalt.err (!%p2596_p2)
}
 0x633   : > { %s2600_s3 = scalar_lea.hbm %s3154_s29, 128  ;;  %s2604_s16 = scalar_lea.hbm %s3203_s6, 256 }
 0x634   : > { %p2601_p4 = scmp.ne.s32.totalorder %s3154_s29, %s2600_s3  ;;  %p2605_p7 = scmp.lt.s32.totalorder %s3154_s29, %s3203_s6 }
 0x635   : > { %p2606_p6 = scmp.lt.s32.totalorder %s2604_s16, %s2600_s3 }
 0x636   : > { %p2602_p1 = pnand %p2601_p4, %p2835_p5 }
 0x637   : > { %p2607_p12 = por %p2606_p6, %p2605_p7 }
 0x638   : > { %p2603_p8 = pneg %p2602_p1 }
 0x63a   : > { %p2608_p0 = pnand %p2607_p12, %p2603_p8 }
 0x63c   : > { %2611 = shalt.err (!%p2608_p0)
}
 0x63d   : > { %2326 = dma.vmem_to_hbm [thread:$0]  (%p2835_p5), %s2022_s13, 128, %s3154_s29, %s2007_s12  }
 0x63e PF: > { %s2033_s0 = sand.u32 1, %s2658_s21   ;;  %p3226_p3 = scmp.ne.s32.totalorder %s3211_s30, 0 }
 0x63f   : > { %p3227_p10 = scmp.ge.s32.totalorder %s2678_s26, 2  ;;  %s2034_s8 = scalar_lea.sflag [#allocation8], %s2033_s0 }
 0x641   : > { %p2346_p11 = pnand %p3227_p10, %p3226_p3 }
 0x643   : > { %p2347_p9 = pneg %p2346_p11 }
 0x645   : > { %2653 = dma.done.wait (%p2347_p9), %s2034_s8, 128  }
 0x646   : > { %2655 = vsyncadd (%p2347_p9), %s2034_s8, 4294967168  ;;  %s26_s26 = sadd.s32 1, %s2678_s26   ;;  %s3228_s21 = smov %s2662_s22 }
 0x647   : > { %p23_p13 = scmp.ge.s32.totalorder %s26_s26, 4   ;;  %s3229_s22 = smov %s2666_s23 }
 0x648   : > { %s3230_s23 = smov %s2847_s17  ;;  %s3231_s24 = smov %s2674_s25 }
 0x649   : > { %s3232_s25 = smov %s3234_s15  ;;  %25 = sbr.rel (!%p23_p13) target bundleno = 14 (0xe), region = 122 }
 0x64e   :  { %2039 = vsyncpa [#allocation7], 1 }
 0x64f   :  { %2041 = vsyncpa [#allocation7 + $0x1], 1 }
 0x650   :  { %2042 = vsyncpa [#allocation10], 1 }
 0x651   :  { %2044 = vsyncpa [#allocation10 + $0x1], 1 }
 0x652   :  { %2045 = vsyncpa [#allocation13], 1 }
 0x653   :  { %2046 = vsyncpa [#allocation8], 1 }
 0x654   :  { %2048 = vsyncpa [#allocation8 + $0x1], 1 }

// kernel: tpu_custom_call.1
= control target key start
LH: loop header
LB: loop body
LE: loop exit
PB: predicated region body
PF: predicated region fallthrough
CT: control target
= control target key end

     0   :  { %s3197_s0 = inlined_call_operand.hbm [shape: f32[2,8,32], index: 0, kind: input, shape index: {}]   ;;  %s3198_s1 = inlined_call_operand.hbm [shape: f32[2,8,32], index: 1, kind: input, shape index: {}]   ;;  %s3199_s2 = inlined_call_operand.hbm [shape: f32[32,32], index: 2, kind: input, shape index: {}]   ;;  %s3200_s3 = inlined_call_operand.hbm [shape: f32[32,64], index: 3, kind: input, shape index: {}]   ;;  %s3201_s4 = inlined_call_operand.hbm [shape: f32[32,32], index: 4, kind: input, shape index: {}]   ;;  %s3202_s5 = inlined_call_operand.vmem [shape: f32[1,32], index: 5, kind: input, shape index: {}]   ;;  %s3203_s6 = inlined_call_operand.hbm [shape: f32[2,8,32], index: 6, kind: output, shape index: {}]  }
   0x1   :  { %3206 = sst [smem:[#allocation21_spill]] %s3197_s0 }
   0x2   :  { %3207 = sst [smem:[#allocation22_spill]] %s3199_s2 }
   0x3   :  { %3208 = sst [smem:[#allocation23_spill]] %s3200_s3 }
   0x4   :  { %3209 = sst [smem:[#allocation24_spill]] %s3201_s4 }
   0x5   :  { %11 = vsyncpa [#allocation7], 0 }
   0x6   :  { %13 = vsyncpa [#allocation7 + $0x1], 0 }
   0x7   :  { %14 = vsyncpa [#allocation10], 0 }
   0x8   :  { %16 = vsyncpa [#allocation10 + $0x1], 0 }
   0x9   :  { %17 = vsyncpa [#allocation13], 0 }
   0xa   :  { %18 = vsyncpa [#allocation8], 0 }
   0xb   :  { %20 = vsyncpa [#allocation8 + $0x1], 0  ;;  %s2739_s21 = smov 0   ;;  %s2741_s22 = smov 0  }
   0xc   :  { %s2743_s23 = smov 0   ;;  %s2745_s24 = smov 0  }
   0xd   :  { %s2747_s25 = smov 0   ;;  %s2749_s26 = smov 0  }
   0xe LB: > { %s2770_s27 = sadd.s32 4294967295, %s2678_s26   ;;  %s2157_s28 = sadd.s32 4294967294, %s2678_s26   ;;  %s2678_s26 = sphi %s2749_s26, %s26_s26   ;;  %s2674_s25 = sphi %s2747_s25, %s3232_s25   ;;  %s2670_s24 = sphi %s2745_s24, %s3231_s24   ;;  %s2666_s23 = sphi %s2743_s23, %s3230_s23   ;;  %s2662_s22 = sphi %s2741_s22, %s3229_s22   ;;  %s2658_s21 = sphi %s2739_s21, %s3228_s21  }
   0xf   : > { %p67_p0 = scmp.ne.s32.totalorder %s2662_s22, %s2658_s21  ;;  %p3204_p1 = scmp.eq.s32.totalorder %s2770_s27, 0 }
  0x10   : > { %p211_p3 = scmp.eq.s32.totalorder %s2157_s28, 1  ;;  %p2158_p5 = scmp.ge.s32.totalorder %s2678_s26, 1 }
  0x11   : > { %p2779_p4 = por %p3204_p1, %p67_p0  ;;  %p218_p7 = scmp.lt.s32.totalorder %s2678_s26, 3 }
  0x12   : > { %p2784_p6 = por %p211_p3, %p67_p0  ;;  %s2680_s8 = smov [#allocation11]  }
  0x13   : > { %s3210_s29 = scalar_select %p2779_p4, 1, 0 }
  0x14   : > { %s3211_s30 = scalar_select %p2784_p6, 1, 0 }
  0x15   : > { %p2789_p8 = pnand %p2158_p5, %p218_p7  ;;  %s230_s9 = sshll.u32 %s2680_s8, 4  ;;  %s231_s9 = int_to_ptr.vmem [resolvable:$true] %s230_s9 }
  0x16   : > { %s2681_s11 = smov [#allocation12]   ;;  %s2682_s13 = smov [#allocation14]  }
  0x17   : > { %p2328_p9 = pneg %p2789_p8  ;;  %s243_s12 = sshll.u32 %s2681_s11, 4  ;;  %s244_s12 = int_to_ptr.vmem [resolvable:$true] %s243_s12 }
  0x18   : > { %s256_s14 = sshll.u32 %s2682_s13, 4  ;;  %s2463_s15 = scalar_lea.vmem %s231_s9, 512  ;;  %s257_s14 = int_to_ptr.vmem [resolvable:$true] %s256_s14 }
  0x19   : > { %p2798_p11 = pnand %p2328_p9, %p3204_p1  ;;  %p2464_p13 = scmp.ne.s32.totalorder %s231_s9, %s2463_s15 }
  0x1a   : > { %p2471_p5 = scmp.lt.s32.totalorder %s231_s9, %s231_s9  ;;  %p2472_p7 = scmp.lt.s32.totalorder %s2463_s15, %s2463_s15 }
  0x1b   : > { %p2454_p12 = pneg %p2798_p11 }
  0x1c   : > { %p2473_p9 = por %p2472_p7, %p2471_p5 }
  0x1d   : > { %p2466_p0 = pnand %p2464_p13, %p2454_p12 }
  0x1f   : > { %p2467_p3 = pneg %p2466_p0 }
  0x21   : > { %p2474_p10 = pnand %p2473_p9, %p2467_p3 }
  0x23   : > { %2477 = shalt.err (!%p2474_p10)
}
  0x24   : > { %s2683_s16 = smov 128   ;;  %s2684_s17 = smov 8  }
  0x25   : > { %s3214_s2 = sld [smem:[#allocation22_spill]]  ;;  %s2489_s20 = scalar_lea.vmem %s244_s12, 512 }
  0x26   : > { %p2490_p1 = scmp.ne.s32.totalorder %s244_s12, %s2489_s20  ;;  %p2497_p2 = scmp.lt.s32.totalorder %s244_s12, %s244_s12 }
  0x27   : > { %p2498_p6 = scmp.lt.s32.totalorder %s2489_s20, %s2489_s20 }
  0x28   : > { %p2492_p13 = pnand %p2490_p1, %p2454_p12 }
  0x29   : > { %p2499_p5 = por %p2498_p6, %p2497_p2 }
  0x2a   : > { %p2493_p0 = pneg %p2492_p13 }
  0x2b   : > { %2331 = dma.hbm_to_vmem [thread:$0]  (!%p2798_p11), %s3214_s2, 512, %s231_s9, [#allocation10], %s2683_s16, %s2683_s16, %s2684_s17  }
  0x2c   : > { %p2500_p3 = pnand %p2499_p5, %p2493_p0 }
  0x2e   : > { %2503 = shalt.err (!%p2500_p3)
}
  0x2f   : > { %s3215_s3 = sld [smem:[#allocation23_spill]]  ;;  %s2515_s9 = scalar_lea.vmem %s257_s14, 512 }
  0x30   : > { %p2516_p10 = scmp.ne.s32.totalorder %s257_s14, %s2515_s9  ;;  %p2523_p9 = scmp.lt.s32.totalorder %s257_s14, %s257_s14 }
  0x31   : > { %p2524_p13 = scmp.lt.s32.totalorder %s2515_s9, %s2515_s9 }
  0x32   : > { %p2518_p7 = pnand %p2516_p10, %p2454_p12 }
  0x33   : > { %p2525_p4 = por %p2524_p13, %p2523_p9 }
  0x34   : > { %p2519_p1 = pneg %p2518_p7 }
  0x35   : > { %2334 = dma.hbm_to_vmem [thread:$0]  (!%p2798_p11), %s3215_s3, 512, %s244_s12, [#allocation13], %s2683_s16, %s2683_s16, %s2684_s17  }
  0x36   : > { %p2526_p2 = pnand %p2525_p4, %p2519_p1 }
  0x38   : > { %2529 = shalt.err (!%p2526_p2)
}
  0x39   : > { %s3216_s4 = sld [smem:[#allocation24_spill]]  ;;  %s54_s12 = sadd.s32 1, %s2666_s23 }
  0x3a   : > { %s45_s15 = sadd.s32 1, %s2674_s25  ;;  %p61_p4 = scmp.ne.s32.totalorder %s2666_s23, %s2662_s22 }
  0x3b   : > { %p47_p6 = scmp.ge.s32.totalorder %s45_s15, 2  ;;  %p62_p12 = scmp.eq.s32.totalorder %s2678_s26, 0 }
  0x3c   : > { %p3217_p0 = scmp.eq.s32.totalorder %s2770_s27, 1  ;;  %p2352_p3 = scmp.lt.s32.totalorder %s2678_s26, 2 }
  0x3d   : > { %s3234_s15 = smov (%p47_p6, %s45_s15), 0  ;;  %p63_p10 = por %p62_p12, %p61_p4 }
  0x3e   : > { %p2835_p5 = por %p3217_p0, %p61_p4  ;;  %s273_s18 = sand.u32 1, %s2666_s23  }
  0x3f   : > { %2337 = dma.hbm_to_vmem [thread:$0]  (!%p2798_p11), %s3216_s4, 512, %s257_s14, [#allocation13], %s2683_s16, %s2683_s16, %s2684_s17  }
  0x40   : > { %s49_s19 = ssub.s32 %s2674_s25, %s3234_s15  ;;  %s2163_s14 = sshll.u32 %s273_s18, 3 }
  0x41   : > { %p52_p11 = scmp.eq.s32.totalorder %s49_s19, 0  ;;  %s2164_s16 = sshll.u32 %s2674_s25, 7 }
  0x42   : > { %s3219_s0 = sld [smem:[#allocation21_spill]]  ;;  %s277_s9 = scalar_lea.vmem [#allocation6], %s2163_s14 }
  0x43   : > { %s2847_s17 = scalar_select %p52_p11, %s2666_s23, %s54_s12  }
  0x44   : > { %s285_s11 = sshll.u32 %s277_s9, 4  ;;  %p2854_p7 = pnand %p2352_p3, %p63_p10  ;;  %s286_s11 = int_to_ptr.vmem [resolvable:$true] %s285_s11 }
  0x45   : > { %s2861_s19 = scalar_lea.hbm %s3198_s1, %s2164_s16  ;;  %s292_s12 = sand.u32 1, %s2678_s26  }
  0x46   : > { %s274_s4 = scalar_lea.sflag [#allocation7], %s273_s18  ;;  %p2532_p1 = pneg %p2854_p7 }
  0x47   : > { %s2543_s20 = scalar_lea.vmem %s286_s11, 128  ;;  %s2685_s28 = smov [#allocation6]  }
  0x48   : > { %s283_s8 = scalar_lea.hbm %s3219_s0, %s2164_s16  ;;  %p2544_p9 = scmp.ne.s32.totalorder %s286_s11, %s2543_s20 }
  0x49   : > { %s2548_s9 = sshll.u32 %s2685_s28, 4  ;;  %s2549_s9 = int_to_ptr.vmem [resolvable:$false] %s2548_s9 }
  0x4a   : > { %p2546_p13 = pnand %p2544_p9, %p2532_p1  ;;  %s2550_s0 = scalar_lea.vmem %s2549_s9, 256 }
  0x4b   : > { %p2551_p4 = scmp.lt.s32.totalorder %s286_s11, %s2549_s9  ;;  %p2552_p6 = scmp.lt.s32.totalorder %s2550_s0, %s2543_s20 }
  0x4c   : > { %p2547_p2 = pneg %p2546_p13 }
  0x4d   : > { %p2553_p12 = por %p2552_p6, %p2551_p4 }
  0x4f   : > { %p2554_p0 = pnand %p2553_p12, %p2547_p2 }
  0x51   : > { %2557 = shalt.err (!%p2554_p0)
}
  0x52   : > { %2341 = dma.hbm_to_vmem [thread:$0]  (!%p2854_p7), %s283_s8, 128, %s286_s11, %s274_s4  }
  0x53   : > { %s296_s2 = scalar_lea.vmem [#allocation9], %s2163_s14  ;;  %s293_s18 = scalar_lea.sflag [#allocation10], %s292_s12 }
  0x54   : > { %s304_s3 = sshll.u32 %s296_s2, 4  ;;  %s2686_s28 = smov [#allocation9]   ;;  %s305_s3 = int_to_ptr.vmem [resolvable:$true] %s304_s3 }
  0x55   : > { %s2571_s16 = scalar_lea.vmem %s305_s3, 128  ;;  %s2576_s9 = sshll.u32 %s2686_s28, 4  ;;  %s2577_s9 = int_to_ptr.vmem [resolvable:$false] %s2576_s9 }
  0x56   : > { %p2572_p3 = scmp.ne.s32.totalorder %s305_s3, %s2571_s16  ;;  %s2578_s0 = scalar_lea.vmem %s2577_s9, 256 }
  0x57   : > { %p2579_p9 = scmp.lt.s32.totalorder %s305_s3, %s2577_s9  ;;  %p2580_p13 = scmp.lt.s32.totalorder %s2578_s0, %s2571_s16 }
  0x58   : > { %p2574_p10 = pnand %p2572_p3, %p2532_p1 }
  0x59   : > { %p2581_p2 = por %p2580_p13, %p2579_p9 }
  0x5a   : > { %p2575_p11 = pneg %p2574_p10 }
  0x5c   : > { %p2582_p4 = pnand %p2581_p2, %p2575_p11 }
  0x5e   : > { %2585 = shalt.err (!%p2582_p4)
}
  0x5f   : > { %2344 = dma.hbm_to_vmem [thread:$0]  (!%p2854_p7), %s2861_s19, 128, %s305_s3, %s293_s18  }
  0x60   : > { %313 = sbr.rel (%p2789_p8) target bundleno = 1598 (0x63e), region = 44  ;;  %s2880_s4 = sand.u32 (!%p2789_p8), 1, %s2662_s22  }
  0x61   : > { %s2883_s14 = sshll.u32 (!%p2789_p8), %s2880_s4, 3  ;;  %s316_s8 = scalar_lea.sflag (!%p2789_p8), [#allocation7], %s2880_s4 }
  0x62   : > { %s319_s11 = scalar_lea.vmem (!%p2789_p8), [#allocation6], %s2883_s14  ;;  %p3221_p1 = scmp.ne.s32.totalorder (!%p2789_p8), %s3210_s29, 0 }
  0x65   : > { %2637 = dma.done.wait (%p3221_p1), %s316_s8, 128  }
  0x66   : > { %2639 = vsyncadd (%p3221_p1), %s316_s8, 4294967168  ;;  %s324_s7 = sand.u32 1, %s2770_s27   ;;  %s328_s19 = scalar_lea.vmem [#allocation9], %s2883_s14 }
  0x67   : > { %s325_s13 = scalar_lea.sflag [#allocation10], %s324_s7 }
  0x68   : > { %2641 = dma.done.wait (%p3221_p1), %s325_s13, 128  }
  0x69   : > { %2643 = vsyncadd (%p3221_p1), %s325_s13, 4294967168  ;;  %p3222_p8 = scmp.eq.s32.totalorder %s2770_s27, 0 }
  0x6b   : > { %2645 = dma.done.wait (%p3222_p8), [#allocation10], 512   ;;  %p3223_p7 = pmov %p3222_p8 }
  0x6d   : > { %2647 = vsyncadd (%p3223_p7), [#allocation10], 4294966784  ;;  %p3224_p6 = pmov %p3223_p7 }
  0x6f   : > { %2649 = dma.done.wait (%p3224_p6), [#allocation13], 1024   ;;  %p3225_p12 = pmov %p3224_p6 }
  0x70   : > { %v2687_v0 = vmov 0.0   ;;  %vm2688_vm0 = vmmov 0   ;;  %v382_v1 = vld [vmem:[#allocation11 + $0x18] sm:$0xff]  ;;  %v381_v2 = vld [vmem:[#allocation11 + $0x10] sm:$0xff]  ;;  %v380_v5 = vld [vmem:[#allocation11 + $0x8] sm:$0xff]  ;;  %vm383_vm1 = vcmask 261120   ;;  %v473_v18 = vlaneseq }
  0x71   : > { %2651 = vsyncadd (%p3225_p12), [#allocation13], 4294966272  ;;  %2237 = vmatprep.subr.mxu0 %v2687_v0  ;;  %2248 = vmatprep.subr.mxu1 %v2687_v0  ;;  %v626_v3 = vld [vmem:[#allocation12 + $0x18] sm:$0xff]  ;;  %v625_v4 = vld [vmem:[#allocation12 + $0x10] sm:$0xff]  ;;  %vm604_vm2 = vcmask 64512   ;;  %s2689_s27 = smov 104  }
  0x72   : > { %2245 = vmatprep.mubr.msk.f32.mxu0 %vm2688_vm0, %v2687_v0  ;;  %2256 = vmatprep.mubr.msk.f32.mxu1 %vm2688_vm0, %v2687_v0  ;;  %v624_v6 = vld [vmem:[#allocation12 + $0x8] sm:$0xff]  ;;  %v379_v7 = vld [vmem:[#allocation11] sm:$0xff]  ;;  %v622_v10 = vld [vmem:[%s328_s19] sm:$0xff]  ;;  %618 = vst.msk [vmem:[#allocation5] sm:$0xff] %vm604_vm2, %v2687_v0  ;;  %s2690_s29 = smov 120   ;;  %s2691_s12 = smov 112  }
  0x73   : > { %2238 = vmatpush3.msra.mxu0 %v382_v1  ;;  %2249 = vmatpush3.msra.mxu1 %v626_v3  ;;  %v378_v8 = vld [vmem:[%s319_s11] sm:$0xff]  ;;  %619 = vst.msk [vmem:[#allocation5 + $0x8] sm:$0xff] %vm604_vm2, %v2687_v0  ;;  %620 = vst.msk [vmem:[#allocation5 + $0x10] sm:$0xff] %vm604_vm2, %v2687_v0  ;;  %v2692_v16 = vmov 1983009808   ;;  %v474_v22 = vshrl.u32 %v473_v18, 7 }
  0x74   : > { %2239 = vmatprep.subr.mxu0 %v2687_v0  ;;  %2250 = vmatprep.subr.mxu1 %v2687_v0  ;;  %v623_v9 = vld [vmem:[#allocation12] sm:$0xff]  ;;  %621 = vst.msk [vmem:[#allocation5 + $0x18] sm:$0xff] %vm604_vm2, %v2687_v0  ;;  %v471_v17 = vunpack.c.l.s4 %v2692_v16  ;;  %v2693_v19 = vmov 1934713408   ;;  %vm609_vm3 = vcmask 7168   ;;  %s2696_s20 = smov 96  }
  0x75   : > { %2240 = vmatpush3.msra.mxu0 %v381_v2  ;;  %2251 = vmatpush3.msra.mxu1 %v625_v4  ;;  %v503_v20 = vunpack.c.l.s4 %v2693_v19  ;;  %614 = vst.msk [vmem:[#allocation4] sm:$0xff] %vm609_vm3, %v2687_v0  ;;  %615 = vst.msk [vmem:[#allocation4 + $0x8] sm:$0xff] %vm609_vm3, %v2687_v0  ;;  %s2697_s2 = smov 88   ;;  %s2698_s3 = smov 80   ;;  %vm1917_vm4 = vcmask 130048   ;;  %vm1919_vm5 = vcmask 195584  }
  0x76   : > { %2241 = vmatprep.subr.mxu0 %v2687_v0  ;;  %2252 = vmatprep.subr.mxu1 %v2687_v0  ;;  %v472_v21 = vunpack.c.0.s8 %v471_v17  ;;  %616 = vst.msk [vmem:[#allocation4 + $0x10] sm:$0xff] %vm609_vm3, %v2687_v0  ;;  %617 = vst.msk [vmem:[#allocation4 + $0x18] sm:$0xff] %vm609_vm3, %v2687_v0  ;;  %s2699_s18 = smov 72   ;;  %s2700_s16 = smov 16  }
  0x77   : > { %2242 = vmatpush3.msra.mxu0 %v380_v5  ;;  %2253 = vmatpush3.msra.mxu1 %v624_v6  ;;  %v504_v25 = vunpack.c.0.s8 %v503_v20  ;;  %s2701_s28 = smov 8   ;;  %s2702_s9 = smov 24  }
  0x78   : > { %2243 = vmatprep.subr.mxu0 %v2687_v0  ;;  %2254 = vmatprep.subr.mxu1 %v2687_v0  ;;  %v2942_v26 = vsub.s32 %v472_v21, %v474_v22  ;;  %s2203_s11 = sshll.u32 %s2670_s24, 7  ;;  %s373_s7 = scalar_lea.vmem [#allocation15], %s2883_s14 }
  0x79   : > { %2244 = vmatpush3.msra.mxu0 %v379_v7  ;;  %2255 = vmatpush3.msra.mxu1 %v623_v9  ;;  %v2944_v33 = vsub.s32 %v504_v25, %v474_v22  ;;  %s2021_s13 = sshll.u32 %s373_s7, 4  ;;  %s2703_s24 = smov [#allocation15]   ;;  %s2022_s13 = int_to_ptr.vmem [resolvable:$true] %s2021_s13 }
  0x7a   : > { %2246 = vmatmul.mubr.msk.f32.vlgmr.msra.gmra.mxu0 %vm383_vm1, %v378_v8  ;;  %2257 = vmatmul.mubr.msk.f32.vlgmr.msra.gmra.mxu1 %vm383_vm1, %v622_v10  ;;  %s2590_s14 = sshll.u32 %s2703_s24, 4  ;;  %s2591_s14 = int_to_ptr.vmem [resolvable:$false] %s2590_s14 }
  0x7b   : > { %2259 = vmatprep.subr.mxu1 %v2687_v0  ;;  %2269 = vmatprep.subr.mxu0 %v2687_v0  ;;  %p2593_p11 = scmp.lt.s32.totalorder %s2022_s13, %s2591_s14 }
  0x7c   : > { %2261 = vmatprep.mubr.msk.f32.mxu1 %vm2688_vm0, %v2687_v0  ;;  %2271 = vmatprep.mubr.msk.f32.mxu0 %vm2688_vm0, %v2687_v0 }
 0x13a   : > { %v453_v11 = vpop.f32.mrf.mxu0  ;;  %v2937_v13 = vpop.f32.mrf.mxu1 }
 0x13b   : > { %v457_v12 = vmul.f32 0.35355338, %v453_v11 }
 0x13c   : > { %v2247_v14 = vpop.f32.mrf.mxu0  ;;  %v2258_v15 = vpop.f32.mrf.mxu1 }
 0x13d   : > { %465 = vrot.lane.b32.xlu1 %v457_v12, %s2689_s27  ;;  %459 = vrot.lane.b32.xlu0 %v457_v12, %s2690_s29 }
 0x141   : > { %702 = vrot.lane.b32.xlu1 %v2937_v13, %s2690_s29  ;;  %462 = vrot.lane.b32.xlu0 %v457_v12, %s2691_s12  ;;  %s3154_s29 = scalar_lea.hbm %s3203_s6, %s2203_s11 }
 0x145   : > { %708 = vrot.lane.b32.xlu1 %v2937_v13, %s2689_s27  ;;  %705 = vrot.lane.b32.xlu0 %v2937_v13, %s2691_s12  ;;  %s2007_s12 = scalar_lea.sflag [#allocation8], %s2880_s4 }
 0x1af   : > { %v466_v23 = vpop.permute.xlu1 %465  ;;  %v460_v24 = vpop.permute.xlu0 %459 }
 0x1b0   : > { %v484_v27 = vcombine.low %v460_v24, %v466_v23  ;;  %v485_v28 = vcombine.high %v460_v24, %v466_v23 }
 0x1b2   : > { %v492_v34 = vrot.slane %v484_v27, %v2942_v26  ;;  %v499_v35 = vrot.slane %v485_v28, %v2942_v26 }
 0x1b3   : > { %v703_v29 = vpop.permute.xlu1 %702  ;;  %v463_v30 = vpop.permute.xlu0 %462 }
 0x1b4   : > { %v468_v31 = vcombine.low %v457_v12, %v463_v30  ;;  %v469_v32 = vcombine.high %v457_v12, %v463_v30 }
 0x1b6   : > { %v476_v36 = vrot.slane %v468_v31, %v2942_v26  ;;  %v483_v37 = vrot.slane %v469_v32, %v2942_v26 }
 0x1b7   : > { %v709_v38 = vpop.permute.xlu1 %708  ;;  %v706_v39 = vpop.permute.xlu0 %705 }
 0x1b8   : > { %v500_v40 = vcombine.low %v476_v36, %v492_v34  ;;  %v501_v41 = vcombine.high %v476_v36, %v492_v34  ;;  %v516_v42 = vcombine.low %v483_v37, %v499_v35  ;;  %v517_v43 = vcombine.high %v483_v37, %v499_v35 }
 0x1b9   : > { %v739_v44 = vcombine.low %v703_v29, %v709_v38  ;;  %v740_v45 = vcombine.high %v703_v29, %v709_v38  ;;  %v723_v46 = vcombine.low %v2937_v13, %v706_v39  ;;  %v724_v47 = vcombine.high %v2937_v13, %v706_v39 }
 0x1ba   : > { %v508_v48 = vrot.slane %v500_v40, %v2944_v33  ;;  %v515_v49 = vrot.slane %v501_v41, %v2944_v33  ;;  %v524_v50 = vrot.slane %v516_v42, %v2944_v33  ;;  %v531_v51 = vrot.slane %v517_v43, %v2944_v33 }
 0x1bb   : > { %v747_v52 = vrot.slane %v739_v44, %v2942_v26  ;;  %v754_v53 = vrot.slane %v740_v45, %v2942_v26  ;;  %v731_v54 = vrot.slane %v723_v46, %v2942_v26  ;;  %v738_v55 = vrot.slane %v724_v47, %v2942_v26 }
 0x1bc   : > { %v536_v56 = vcombine.low %v508_v48, %v515_v49  ;;  %v2175_v57 = vcombine.high %v508_v48, %v515_v49  ;;  %v552_v58 = vcombine.low %v524_v50, %v531_v51  ;;  %v2176_v59 = vcombine.high %v524_v50, %v531_v51 }
 0x1bd   : > { %v787_v60 = vcombine.low %v731_v54, %v747_v52  ;;  %v788_v61 = vcombine.high %v731_v54, %v747_v52  ;;  %v803_v62 = vcombine.low %v738_v55, %v754_v53  ;;  %v804_v63 = vcombine.high %v738_v55, %v754_v53 }
 0x1be   : > { %v543_v1 = vrot.slane %v536_v56, %v2942_v26  ;;  %v551_v2 = vrot.slane %v2175_v57, %v2942_v26  ;;  %v559_v3 = vrot.slane %v552_v58, %v2942_v26  ;;  %v567_v4 = vrot.slane %v2176_v59, %v2942_v26 }
 0x1bf   : > { %v795_v5 = vrot.slane %v787_v60, %v2944_v33  ;;  %v802_v6 = vrot.slane %v788_v61, %v2944_v33  ;;  %v811_v7 = vrot.slane %v803_v62, %v2944_v33  ;;  %v818_v8 = vrot.slane %v804_v63, %v2944_v33 }
 0x1c0   : > { %v568_v9 = vcombine.low %v543_v1, %v551_v2  ;;  %v569_v10 = vcombine.high %v543_v1, %v551_v2  ;;  %v584_v11 = vcombine.low %v559_v3, %v567_v4  ;;  %v585_v12 = vcombine.high %v559_v3, %v567_v4 }
 0x1c1   : > { %v2178_v14 = vcombine.low %v795_v5, %v802_v6  ;;  %v2180_v15 = vcombine.high %v795_v5, %v802_v6  ;;  %v2182_v16 = vcombine.low %v811_v7, %v818_v8  ;;  %v2184_v17 = vcombine.high %v811_v7, %v818_v8 }
 0x1c2   : > { %v576_v18 = vrot.slane %v568_v9, %v2944_v33  ;;  %v583_v19 = vrot.slane %v569_v10, %v2944_v33  ;;  %v592_v20 = vrot.slane %v584_v11, %v2944_v33  ;;  %v599_v21 = vrot.slane %v585_v12, %v2944_v33 }
 0x1c3   : > { %v867_v22 = vrot.slane %v2178_v14, %v2942_v26  ;;  %v883_v23 = vrot.slane %v2180_v15, %v2942_v26  ;;  %v899_v24 = vrot.slane %v2182_v16, %v2942_v26  ;;  %v915_v25 = vrot.slane %v2184_v17, %v2942_v26 }
 0x1c4   : > { %v600_v27 = vcombine.low %v576_v18, %v592_v20  ;;  %v601_v28 = vcombine.high %v576_v18, %v592_v20  ;;  %v602_v29 = vcombine.low %v583_v19, %v599_v21  ;;  %v603_v30 = vcombine.high %v583_v19, %v599_v21 }
 0x1c5   : > { %v923_v31 = vcombine.low %v867_v22, %v883_v23  ;;  %v924_v32 = vcombine.high %v867_v22, %v883_v23  ;;  %v955_v34 = vcombine.low %v899_v24, %v915_v25  ;;  %v956_v35 = vcombine.high %v899_v24, %v915_v25 }
 0x1c6   : > { %605 = vst.msk [vmem:[#allocation2] sm:$0xff] %vm604_vm2, %v600_v27  ;;  %606 = vst.msk [vmem:[#allocation2 + $0x8] sm:$0xff] %vm604_vm2, %v601_v28  ;;  %v2694_v48 = vmov -inf   ;;  %v2695_v61 = vmov 0  }
 0x1c7   : > { %607 = vst.msk [vmem:[#allocation2 + $0x10] sm:$0xff] %vm604_vm2, %v602_v29  ;;  %608 = vst.msk [vmem:[#allocation2 + $0x18] sm:$0xff] %vm604_vm2, %v603_v30  ;;  %v931_v36 = vrot.slane %v923_v31, %v2944_v33  ;;  %v963_v37 = vrot.slane %v955_v34, %v2944_v33  ;;  %v938_v38 = vrot.slane %v924_v32, %v2944_v33  ;;  %2426 = vset.pattern.permute.xlu1 %v2695_v61 }
 0x1c8   : > { %v970_v39 = vrot.slane %v956_v35, %v2944_v33  ;;  %610 = vst.msk [vmem:[#allocation3] sm:$0xff] %vm609_vm3, %v2694_v48  ;;  %611 = vst.msk [vmem:[#allocation3 + $0x8] sm:$0xff] %vm609_vm3, %v2694_v48  ;;  %2427 = vset.pattern.permute.xlu0 %v2695_v61 }
 0x1c9   : > { %v987_v40 = vcombine.low %v931_v36, %v963_v37  ;;  %v988_v43 = vcombine.high %v931_v36, %v963_v37  ;;  %612 = vst.msk [vmem:[#allocation3 + $0x10] sm:$0xff] %vm609_vm3, %v2694_v48  ;;  %613 = vst.msk [vmem:[#allocation3 + $0x18] sm:$0xff] %vm609_vm3, %v2694_v48 }
 0x1ca   : > { %v989_v41 = vcombine.low %v938_v38, %v970_v39  ;;  %v990_v46 = vcombine.high %v938_v38, %v970_v39 }
 0x1cb   : > { %2260 = vmatpush3.xpose.msk.msra.mxu1 %vm604_vm2, %v987_v40 }
 0x1cc   : > { %2270 = vmatpush3.xpose.msk.msra.mxu0 %vm604_vm2, %v989_v41  ;;  %2264 = vmatprep.subr.mxu1 %v2687_v0 }
 0x1cd   : > { %2279 = vmatprep.subr.mxu0 %v2687_v0  ;;  %v995_v42 = vld [vmem:[#allocation2] sm:$0xff]  ;;  %v996_v45 = vld [vmem:[#allocation2 + $0x8] sm:$0xff] }
 0x1ce   : > { %v997_v44 = vld [vmem:[#allocation2 + $0x10] sm:$0xff]  ;;  %2262 = vmatmul.mubr.msk.f32.vlgmr.msra.gmra.mxu1 %vm604_vm2, %v995_v42  ;;  %v998_v47 = vld [vmem:[#allocation2 + $0x18] sm:$0xff] }
 0x1cf   : > { %2272 = vmatmul.mubr.msk.f32.vlgmr.msra.gmra.mxu0 %vm604_vm2, %v997_v44  ;;  %2265 = vmatpush3.xpose.msk.msra.mxu1 %vm604_vm2, %v988_v43  ;;  %v3026_v62 = vld [vmem:[#allocation3] sm:$0xff]  ;;  %v3031_v2 = vld [vmem:[#allocation3 + $0x8] sm:$0xff] }
 0x1d0   : > { %2266 = vmatprep.mubr.msk.f32.mxu1 %vm2688_vm0, %v2687_v0  ;;  %2274 = vmatprep.subr.mxu1 %v2687_v0  ;;  %v3033_v3 = vld [vmem:[#allocation3 + $0x10] sm:$0xff]  ;;  %v3046_v9 = vld [vmem:[#allocation3 + $0x18] sm:$0xff] }
 0x1d1   : > { %2281 = vmatprep.mubr.msk.f32.mxu0 %vm2688_vm0, %v2687_v0 }
 0x1d2   : > { %2267 = vmatmul.mubr.msk.f32.vlgmr.msra.gmra.mxu1 %vm604_vm2, %v996_v45 }
 0x1d3   : > { %2275 = vmatpush3.xpose.msk.msra.mxu1 %vm604_vm2, %v990_v46  ;;  %2276 = vmatprep.mubr.msk.f32.mxu1 %vm2688_vm0, %v2687_v0 }
 0x1d4   : > { %2284 = vmatprep.subr.mxu1 %v2687_v0 }
 0x1d6   : > { %2277 = vmatmul.mubr.msk.f32.vlgmr.msra.gmra.mxu1 %vm604_vm2, %v998_v47 }
 0x1d7   : > { %2286 = vmatprep.mubr.msk.f32.mxu1 %vm2688_vm0, %v2687_v0 }
 0x28e   : > { %v1072_v49 = vpop.f32.mrf.mxu1 }
 0x28f   : > { %v3016_v50 = vpop.f32.mrf.mxu0  ;;  %v1308_v51 = vsel %vm604_vm2, %v1072_v49, -inf }
 0x290   : > { %1309 = vmax.xlane.f32.xlu0 %v1308_v51  ;;  %v2263_v52 = vpop.f32.mrf.mxu1  ;;  %v1314_v56 = vsel %vm604_vm2, %v3016_v50, -inf }
 0x291   : > { %v2273_v53 = vpop.f32.mrf.mxu0 }
 0x292   : > { %v1148_v54 = vpop.f32.mrf.mxu1 }
 0x293   : > { %v1311_v55 = vsel %vm604_vm2, %v1148_v54, -inf }
 0x294   : > { %1312 = vmax.xlane.f32.xlu1 %v1311_v55  ;;  %v2268_v57 = vpop.f32.mrf.mxu1  ;;  %1315 = vmax.xlane.f32.xlu0 %v1314_v56 }
 0x296   : > { %v3022_v58 = vpop.f32.mrf.mxu1 }
 0x297   : > { %v1317_v59 = vsel %vm604_vm2, %v3022_v58, -inf }
 0x298   : > { %v2278_v60 = vpop.f32.mrf.mxu1  ;;  %1318 = vmax.xlane.f32.xlu0 %v1317_v59 }
 0x319   : > { %v1310_v63 = vpop.xlane.xlu0 %1309 }
 0x31a   : > { %v3029_v1 = vmax.f32 %v3026_v62, %v1310_v63 }
 0x31c   : > { %v1324_v4 = vsub.f32 %v3026_v62, %v3029_v1  ;;  %1725 = vst.msk [vmem:[#allocation3] sm:$0xff] %vm609_vm3, %v3029_v1  ;;  %1338 = vperm.xlu1 %2426, %v3029_v1  }
 0x31d   : > { %v1313_v5 = vpop.xlane.xlu1 %1312  ;;  %v1316_v6 = vpop.xlane.xlu0 %1315 }
 0x31e   : > { %v3041_v7 = vmax.f32 %v3031_v2, %v1313_v5  ;;  %v3044_v8 = vmax.f32 %v3033_v3, %v1316_v6 }
 0x320   : > { %v1325_v10 = vsub.f32 %v3031_v2, %v3041_v7  ;;  %1726 = vst.msk [vmem:[#allocation3 + $0x8] sm:$0xff] %vm609_vm3, %v3041_v7  ;;  %v1326_v11 = vsub.f32 %v3033_v3, %v3044_v8  ;;  %1727 = vst.msk [vmem:[#allocation3 + $0x10] sm:$0xff] %vm609_vm3, %v3044_v8  ;;  %711 = vrot.lane.b32.xlu1 %v2937_v13, %s2696_s20  ;;  %1343 = vperm.xlu0 %2427, %v3041_v7   ;;  %s2586_s20 = scalar_lea.vmem %s2022_s13, 128 }
 0x321   : > { %v1319_v12 = vpop.xlane.xlu0 %1318  ;;  %p2587_p0 = scmp.ne.s32.totalorder %s2022_s13, %s2586_s20 }
 0x322   : > { %v3059_v14 = vmax.f32 %v3046_v9, %v1319_v12 }
 0x323   : > { %p2588_p3 = pnand %p2587_p0, %p2835_p5 }
 0x324   : > { %v1327_v15 = vsub.f32 %v3046_v9, %v3059_v14  ;;  %1728 = vst.msk [vmem:[#allocation3 + $0x18] sm:$0xff] %vm609_vm3, %v3059_v14  ;;  %714 = vrot.lane.b32.xlu1 %v2937_v13, %s2697_s2  ;;  %v1369_v9 = vld [vmem:[#allocation4 + $0x8] sm:$0xff]  ;;  %s2592_s2 = scalar_lea.vmem %s2591_s14, 256 }
 0x325   : > { %p2589_p10 = pneg %p2588_p3  ;;  %p2594_p9 = scmp.lt.s32.totalorder %s2592_s2, %s2586_s20 }
 0x326   : > { %v1334_v1 = vmul.f32 1.442695, %v1327_v15 }
 0x327   : > { %p2595_p13 = por %p2594_p9, %p2593_p11 }
 0x328   : > { %717 = vrot.lane.b32.xlu1 %v2937_v13, %s2698_s3 }
 0x329   : > { %p2596_p2 = pnand %p2595_p13, %p2589_p10 }
 0x32c   : > { %720 = vrot.lane.b32.xlu1 %v2937_v13, %s2699_s18 }
 0x330   : > { %1348 = vperm.xlu1 %2426, %v3044_v8  }
 0x334   : > { %1353 = vperm.xlu1 %2426, %v3059_v14  }
 0x397   : > { %v1339_v16 = vpop.permute.xlu1 %1338 }
 0x398   : > { %v1356_v17 = vsub.f32 %v1072_v49, %v1339_v16 }
 0x39a   : > { %v1360_v18 = vmul.f32 1.442695, %v1356_v17 }
 0x39b   : > { %v712_v19 = vpop.permute.xlu1 %711  ;;  %v1344_v20 = vpop.permute.xlu0 %1343 }
 0x39c   : > { %2428 = vpow2.f32 %v1360_v18  ;;  %v1357_v21 = vsub.f32 %v1148_v54, %v1344_v20 }
 0x39e   : > { %v1362_v22 = vmul.f32 1.442695, %v1357_v21 }
 0x39f   : > { %v715_v23 = vpop.permute.xlu1 %714 }
 0x3a0   : > { %2430 = vpow2.f32 %v1362_v22 }
 0x3a3   : > { %v718_v24 = vpop.permute.xlu1 %717 }
 0x3a4   : > { %v755_v25 = vcombine.low %v712_v19, %v718_v24  ;;  %v756_v27 = vcombine.high %v712_v19, %v718_v24  ;;  %v1328_v24 = vmul.f32 1.442695, %v1324_v4  ;;  %v1330_v4 = vmul.f32 1.442695, %v1325_v10 }
 0x3a6   : > { %v763_v31 = vrot.slane %v755_v25, %v2942_v26  ;;  %v770_v32 = vrot.slane %v756_v27, %v2942_v26 }
 0x3a7   : > { %v721_v28 = vpop.permute.xlu1 %720 }
 0x3a8   : > { %v771_v29 = vcombine.low %v715_v23, %v721_v28  ;;  %v772_v13 = vcombine.high %v715_v23, %v721_v28  ;;  %v1332_v28 = vmul.f32 1.442695, %v1326_v11 }
 0x3a9   : > { %v2429_v30 = vpop.eup %2428 }
 0x3aa   : > { %v779_v34 = vrot.slane %v771_v29, %v2942_v26  ;;  %v786_v35 = vrot.slane %v772_v13, %v2942_v26  ;;  %v1376_v36 = vsel %vm604_vm2, %v2429_v30, 0.0  ;;  %v1368_v13 = vld [vmem:[#allocation4] sm:$0xff] }
 0x3ab   : > { %v1349_v37 = vpop.permute.xlu1 %1348  ;;  %1377 = vadd.xlane.f32.xlu1 %v1376_v36 }
 0x3ac   : > { %v819_v38 = vcombine.low %v763_v31, %v779_v34  ;;  %v820_v39 = vcombine.high %v763_v31, %v779_v34  ;;  %v835_v40 = vcombine.low %v770_v32, %v786_v35  ;;  %v836_v41 = vcombine.high %v770_v32, %v786_v35  ;;  %v1370_v34 = vld [vmem:[#allocation4 + $0x10] sm:$0xff] }
 0x3ad   : > { %v2431_v42 = vpop.eup %2430  ;;  %v1358_v43 = vsub.f32 %v3016_v50, %v1349_v37  ;;  %v1371_v37 = vld [vmem:[#allocation4 + $0x18] sm:$0xff] }
 0x3ae   : > { %v827_v44 = vrot.slane %v819_v38, %v2944_v33  ;;  %v834_v45 = vrot.slane %v820_v39, %v2944_v33  ;;  %v843_v46 = vrot.slane %v835_v40, %v2944_v33  ;;  %v850_v47 = vrot.slane %v836_v41, %v2944_v33 }
 0x3af   : > { %v1364_v48 = vmul.f32 1.442695, %v1358_v43  ;;  %v1354_v49 = vpop.permute.xlu1 %1353  ;;  %v1379_v51 = vsel %vm604_vm2, %v2431_v42, 0.0 }
 0x3b0   : > { %v2179_v52 = vcombine.low %v827_v44, %v834_v45  ;;  %v2181_v53 = vcombine.high %v827_v44, %v834_v45  ;;  %v2183_v54 = vcombine.low %v843_v46, %v850_v47  ;;  %v2185_v55 = vcombine.high %v843_v46, %v850_v47  ;;  %1380 = vadd.xlane.f32.xlu0 %v1379_v51  ;;  %v1398_v51 = vld [vmem:[#allocation5 + $0x8] sm:$0xff] }
 0x3b1   : > { %2432 = vpow2.f32 %v1364_v48  ;;  %v1359_v50 = vsub.f32 %v3022_v58, %v1354_v49  ;;  %v1397_v49 = vld [vmem:[#allocation5] sm:$0xff] }
 0x3b2   : > { %v874_v56 = vrot.slane %v2179_v52, %v2942_v26  ;;  %v890_v57 = vrot.slane %v2181_v53, %v2942_v26  ;;  %v906_v59 = vrot.slane %v2183_v54, %v2942_v26  ;;  %v922_v60 = vrot.slane %v2185_v55, %v2942_v26 }
 0x3b3   : > { %v1366_v61 = vmul.f32 1.442695, %v1359_v50  ;;  %v1924_v50 = vld [vmem:[#allocation14 + $0x18] sm:$0xff] }
 0x3b4   : > { %v939_v63 = vcombine.low %v874_v56, %v890_v57  ;;  %v971_v5 = vcombine.low %v906_v59, %v922_v60  ;;  %v940_v6 = vcombine.high %v874_v56, %v890_v57  ;;  %v972_v12 = vcombine.high %v906_v59, %v922_v60  ;;  %v1399_v56 = vld [vmem:[#allocation5 + $0x10] sm:$0xff] }
 0x3b5   : > { %2434 = vpow2.f32 %v1366_v61 }
 0x3b6   : > { %v947_v16 = vrot.slane %v939_v63, %v2944_v33  ;;  %v979_v17 = vrot.slane %v971_v5, %v2944_v33  ;;  %v954_v58 = vrot.slane %v940_v6, %v2944_v33  ;;  %v986_v18 = vrot.slane %v972_v12, %v2944_v33  ;;  %v1400_v12 = vld [vmem:[#allocation5 + $0x18] sm:$0xff] }
 0x3b7   : > { %2436 = vpow2.f32 %v1328_v24 }
 0x3b8   : > { %v991_v19 = vcombine.low %v947_v16, %v979_v17  ;;  %v992_v20 = vcombine.high %v947_v16, %v979_v17  ;;  %v993_v21 = vcombine.low %v954_v58, %v986_v18  ;;  %v994_v22 = vcombine.high %v954_v58, %v986_v18 }
 0x3b9   : > { %2438 = vpow2.f32 %v1332_v28 }
 0x3ba   : > { %2280 = vmatpush3.msra.mxu0 %v991_v19  ;;  %2285 = vmatpush3.msra.mxu1 %v992_v20  ;;  %2440 = vpow2.f32 %v1334_v1 }
 0x3bb   : > { %2282 = vmatmul.mubr.msk.f32.vlgmr.msra.gmra.mxu0 %vm604_vm2, %v2429_v30  ;;  %2287 = vmatmul.mubr.msk.f32.vlgmr.msra.gmra.mxu1 %vm604_vm2, %v2431_v42  ;;  %2442 = vpow2.f32 %v1330_v4 }
 0x3bc   : > { %2289 = vmatprep.subr.mxu0 %v2687_v0  ;;  %2294 = vmatprep.subr.mxu1 %v2687_v0 }
 0x3bd   : > { %2290 = vmatpush3.msra.mxu0 %v993_v21  ;;  %2295 = vmatpush3.msra.mxu1 %v994_v22 }
 0x3be   : > { %v2433_v23 = vpop.eup %2432  ;;  %2291 = vmatprep.mubr.msk.f32.mxu0 %vm2688_vm0, %v2687_v0  ;;  %2296 = vmatprep.mubr.msk.f32.mxu1 %vm2688_vm0, %v2687_v0 }
 0x3bf   : > { %2292 = vmatmul.mubr.msk.f32.vlgmr.msra.gmra.mxu0 %vm604_vm2, %v2433_v23  ;;  %v1382_v25 = vsel %vm604_vm2, %v2433_v23, 0.0  ;;  %2299 = vmatprep.subr.mxu0 %v2687_v0 }
 0x3c0   : > { %1383 = vadd.xlane.f32.xlu1 %v1382_v25  ;;  %2307 = vmatprep.mubr.msk.f32.mxu0 %vm2688_vm0, %v2687_v0 }
 0x3c1   : > { %2300 = vmatpush3.msra.mxu0 %v1924_v50 }
 0x3c2   : > { %v2435_v27 = vpop.eup %2434  ;;  %2301 = vmatprep.subr.mxu0 %v2687_v0 }
 0x3c3   : > { %2297 = vmatmul.mubr.msk.f32.vlgmr.msra.gmra.mxu1 %vm604_vm2, %v2435_v27  ;;  %v1385_v62 = vsel %vm604_vm2, %v2435_v27, 0.0 }
 0x3c4   : > { %1386 = vadd.xlane.f32.xlu0 %v1385_v62  ;;  %v2437_v29 = vpop.eup %2436 }
 0x3c5   : > { %v1372_v30 = vmul.f32 %v2437_v29, %v1368_v13 }
 0x3c6   : > { %v2439_v3 = vpop.eup %2438 }
 0x3c7   : > { %v2441_v8 = vpop.eup %2440  ;;  %v1374_v35 = vmul.f32 %v2439_v3, %v1370_v34 }
 0x3c8   : > { %v2443_v11 = vpop.eup %2442  ;;  %v1375_v40 = vmul.f32 %v2441_v8, %v1371_v37  ;;  %v1922_v37 = vld [vmem:[#allocation14 + $0x8] sm:$0xff] }
 0x3c9   : > { %v1373_v14 = vmul.f32 %v2443_v11, %v1369_v9 }
 0x3d1   : > { %1403 = vperm.xlu1 %2426, %v2437_v29  }
 0x3d5   : > { %1413 = vperm.xlu1 %2426, %v2439_v3  }
 0x3d9   : > { %1418 = vperm.xlu1 %2426, %v2441_v8  }
 0x3da   : > { %1408 = vperm.xlu0 %2427, %v2443_v11  }
 0x434   : > { %v1378_v31 = vpop.xlane.xlu1 %1377 }
 0x435   : > { %v1388_v32 = vadd.f32 %v1378_v31, %v1372_v30 }
 0x437   : > { %1393 = vst.msk [vmem:[#allocation4] sm:$0xff] %vm609_vm3, %v1388_v32 }
 0x439   : > { %v1381_v2 = vpop.xlane.xlu0 %1380 }
 0x43a   : > { %v1389_v7 = vadd.f32 %v1381_v2, %v1373_v14 }
 0x43c   : > { %1394 = vst.msk [vmem:[#allocation4 + $0x8] sm:$0xff] %vm609_vm3, %v1389_v7 }
 0x43e   : > { %v1736_v10 = vld [vmem:[#allocation4] sm:$0xff] }
 0x43f   : > { %2444 = vrcp.f32 %v1736_v10 }
 0x443   : > { %v1737_v15 = vld [vmem:[#allocation4 + $0x8] sm:$0xff] }
 0x444   : > { %2446 = vrcp.f32 %v1737_v15 }
 0x449   : > { %v1384_v36 = vpop.xlane.xlu1 %1383 }
 0x44a   : > { %v1390_v38 = vadd.f32 %v1384_v36, %v1374_v35  ;;  %v1923_v36 = vld [vmem:[#allocation14 + $0x10] sm:$0xff] }
 0x44b   : > { %2302 = vmatpush3.msra.mxu0 %v1923_v36 }
 0x44c   : > { %v2445_v39 = vpop.eup %2444  ;;  %1395 = vst.msk [vmem:[#allocation4 + $0x10] sm:$0xff] %vm609_vm3, %v1390_v38  ;;  %2303 = vmatprep.subr.mxu0 %v2687_v0 }
 0x44d   : > { %v1387_v41 = vpop.xlane.xlu0 %1386  ;;  %1746 = vperm.xlu0 %2427, %v2445_v39   ;;  %v1404_v48 = vpop.permute.xlu1 %1403  ;;  %2304 = vmatpush3.msra.mxu0 %v1922_v37 }
 0x44e   : > { %v1391_v42 = vadd.f32 %v1387_v41, %v1375_v40  ;;  %v1421_v54 = vmul.f32 %v1404_v48, %v1397_v49  ;;  %2305 = vmatprep.subr.mxu0 %v2687_v0 }
 0x450   : > { %1396 = vst.msk [vmem:[#allocation4 + $0x18] sm:$0xff] %vm609_vm3, %v1391_v42 }
 0x451   : > { %v2447_v43 = vpop.eup %2446  ;;  %v1414_v53 = vpop.permute.xlu1 %1413 }
 0x452   : > { %1751 = vperm.xlu1 %2426, %v2447_v43   ;;  %v1423_v6 = vmul.f32 %v1414_v53, %v1399_v56 }
 0x453   : > { %v1738_v44 = vld [vmem:[#allocation4 + $0x10] sm:$0xff] }
 0x454   : > { %2448 = vrcp.f32 %v1738_v44 }
 0x455   : > { %v1409_v52 = vpop.permute.xlu0 %1408  ;;  %v1419_v16 = vpop.permute.xlu1 %1418 }
 0x456   : > { %v1422_v55 = vmul.f32 %v1409_v52, %v1398_v51  ;;  %v1424_v19 = vmul.f32 %v1419_v16, %v1400_v12 }
 0x457   : > { %v1739_v45 = vld [vmem:[#allocation4 + $0x18] sm:$0xff] }
 0x458   : > { %2450 = vrcp.f32 %v1739_v45 }
 0x461   : > { %v2449_v46 = vpop.eup %2448 }
 0x462   : > { %1756 = vperm.xlu0 %2427, %v2449_v46   ;;  %v1921_v46 = vld [vmem:[#allocation14] sm:$0xff] }
 0x463   : > { %2306 = vmatpush3.msra.mxu0 %v1921_v46 }
 0x465   : > { %v2451_v47 = vpop.eup %2450 }
 0x466   : > { %1761 = vperm.xlu1 %2426, %v2451_v47  }
 0x47b   : > { %v1494_v57 = vpop.f32.mrf.mxu0  ;;  %v1567_v59 = vpop.f32.mrf.mxu1 }
 0x47c   : > { %v1717_v60 = vadd.f32 %v1494_v57, %v1421_v54  ;;  %v1718_v61 = vadd.f32 %v1567_v59, %v1422_v55 }
 0x47d   : > { %v2283_v63 = vpop.f32.mrf.mxu0  ;;  %v2288_v5 = vpop.f32.mrf.mxu1 }
 0x47e   : > { %1721 = vst.msk [vmem:[#allocation5] sm:$0xff] %vm604_vm2, %v1717_v60  ;;  %1722 = vst.msk [vmem:[#allocation5 + $0x8] sm:$0xff] %vm604_vm2, %v1718_v61 }
 0x47f   : > { %v1640_v17 = vpop.f32.mrf.mxu0 }
 0x480   : > { %v1719_v58 = vadd.f32 %v1640_v17, %v1423_v6  ;;  %v2200_v17 = vld [vmem:[%s3202_s5] ss:$0 sm:$0xff] }
 0x481   : > { %v2293_v18 = vpop.f32.mrf.mxu0 }
 0x482   : > { %1723 = vst.msk [vmem:[#allocation5 + $0x10] sm:$0xff] %vm604_vm2, %v1719_v58 }
 0x483   : > { %v1713_v20 = vpop.f32.mrf.mxu1 }
 0x484   : > { %v1720_v21 = vadd.f32 %v1713_v20, %v1424_v19 }
 0x485   : > { %v2298_v22 = vpop.f32.mrf.mxu1  ;;  %v1732_v62 = vld [vmem:[#allocation5] sm:$0xff]  ;;  %v1733_v4 = vld [vmem:[#allocation5 + $0x8] sm:$0xff] }
 0x486   : > { %1724 = vst.msk [vmem:[#allocation5 + $0x18] sm:$0xff] %vm604_vm2, %v1720_v21 }
 0x489   : > { %v1734_v27 = vld [vmem:[#allocation5 + $0x10] sm:$0xff] }
 0x48d   : > { %v1735_v29 = vld [vmem:[#allocation5 + $0x18] sm:$0xff] }
 0x4c8   : > { %v1747_v23 = vpop.permute.xlu0 %1746 }
 0x4c9   : > { %v1764_v1 = vmul.f32 %v1747_v23, %v1732_v62 }
 0x4cd   : > { %v1752_v24 = vpop.permute.xlu1 %1751 }
 0x4ce   : > { %v1765_v8 = vmul.f32 %v1752_v24, %v1733_v4 }
 0x4dd   : > { %v1757_v25 = vpop.permute.xlu0 %1756 }
 0x4de   : > { %v1766_v28 = vmul.f32 %v1757_v25, %v1734_v27 }
 0x4e0   : > { %v1768_v11 = vcombine.low %v1764_v1, %v1766_v28  ;;  %v1769_v13 = vcombine.high %v1764_v1, %v1766_v28 }
 0x4e1   : > { %v1762_v3 = vpop.permute.xlu1 %1761 }
 0x4e2   : > { %v1767_v30 = vmul.f32 %v1762_v3, %v1735_v29  ;;  %v1776_v9 = vrot.slane %v1768_v11, %v2942_v26  ;;  %v1783_v14 = vrot.slane %v1769_v13, %v2942_v26 }
 0x4e4   : > { %v1784_v31 = vcombine.low %v1765_v8, %v1767_v30  ;;  %v1785_v32 = vcombine.high %v1765_v8, %v1767_v30 }
 0x4e6   : > { %v1792_v2 = vrot.slane %v1784_v31, %v2942_v26  ;;  %v1799_v7 = vrot.slane %v1785_v32, %v2942_v26 }
 0x4e8   : > { %v1800_v10 = vcombine.low %v1776_v9, %v1792_v2  ;;  %v1801_v15 = vcombine.high %v1776_v9, %v1792_v2  ;;  %v1816_v34 = vcombine.low %v1783_v14, %v1799_v7  ;;  %v1817_v35 = vcombine.high %v1783_v14, %v1799_v7 }
 0x4ea   : > { %v1808_v38 = vrot.slane %v1800_v10, %v2944_v33  ;;  %v1815_v39 = vrot.slane %v1801_v15, %v2944_v33  ;;  %v1824_v40 = vrot.slane %v1816_v34, %v2944_v33  ;;  %v1831_v41 = vrot.slane %v1817_v35, %v2944_v33 }
 0x4ec   : > { %v1836_v42 = vcombine.low %v1808_v38, %v1815_v39  ;;  %v2198_v43 = vcombine.high %v1808_v38, %v1815_v39  ;;  %v1852_v44 = vcombine.low %v1824_v40, %v1831_v41  ;;  %v2199_v45 = vcombine.high %v1824_v40, %v1831_v41 }
 0x4ee   : > { %v1843_v47 = vrot.slane %v1836_v42, %v2942_v26  ;;  %v1851_v48 = vrot.slane %v2198_v43, %v2942_v26  ;;  %v1859_v49 = vrot.slane %v1852_v44, %v2942_v26  ;;  %v1867_v51 = vrot.slane %v2199_v45, %v2942_v26 }
 0x4f0   : > { %v1869_v52 = vcombine.high %v1843_v47, %v1851_v48  ;;  %v1885_v53 = vcombine.high %v1859_v49, %v1867_v51  ;;  %v1868_v54 = vcombine.low %v1843_v47, %v1851_v48  ;;  %v1884_v55 = vcombine.low %v1859_v49, %v1867_v51 }
 0x4f2   : > { %v1883_v50 = vrot.slane %v1869_v52, %v2944_v33  ;;  %v1899_v56 = vrot.slane %v1885_v53, %v2944_v33  ;;  %v1876_v0 = vrot.slane %v1868_v54, %v2944_v33  ;;  %v1892_v57 = vrot.slane %v1884_v55, %v2944_v33 }
 0x4f4   : > { %v1902_v59 = vcombine.low %v1883_v50, %v1899_v56  ;;  %v1901_v60 = vcombine.high %v1876_v0, %v1892_v57  ;;  %v1900_v61 = vcombine.low %v1876_v0, %v1892_v57  ;;  %v1903_v26 = vcombine.high %v1883_v50, %v1899_v56 }
 0x4f6   : > { %1909 = vrot.lane.b32.xlu1 %v1902_v59, %s2700_s16  ;;  %1905 = vrot.lane.b32.xlu0 %v1901_v60, %s2701_s28 }
 0x4fa   : > { %1913 = vrot.lane.b32.xlu0 %v1903_v26, %s2702_s9 }
 0x568   : > { %v1906_v63 = vpop.permute.xlu0 %1905  ;;  %v1910_v5 = vpop.permute.xlu1 %1909 }
 0x569   : > { %v1916_v6 = vsel %vm604_vm2, %v1900_v61, %v1906_v63 }
 0x56a   : > { %v1918_v12 = vsel %vm1917_vm4, %v1916_v6, %v1910_v5 }
 0x56c   : > { %v1914_v33 = vpop.permute.xlu0 %1913 }
 0x56d   : > { %v1920_v16 = vsel %vm1919_vm5, %v1918_v12, %v1914_v33 }
 0x56e   : > { %2308 = vmatmul.mubr.msk.f32.vlgmr.msra.gmra.mxu0 %vm383_vm1, %v1920_v16 }
 0x62e   : > { %v2001_v58 = vpop.f32.mrf.mxu0 }
 0x62f   : > { %v2002_v18 = vadd.f32 %v2200_v17, %v2001_v58 }
 0x630   : > { %v2309_v19 = vpop.f32.mrf.mxu0 }
 0x631   : > { %2005 = vst.msk [vmem:[%s373_s7] sm:$0xff] %vm383_vm1, %v2002_v18 }
 0x632   : > { %2599 = shalt.err (!%p2596_p2)
}
 0x633   : > { %s2600_s3 = scalar_lea.hbm %s3154_s29, 128  ;;  %s2604_s16 = scalar_lea.hbm %s3203_s6, 256 }
 0x634   : > { %p2601_p4 = scmp.ne.s32.totalorder %s3154_s29, %s2600_s3  ;;  %p2605_p7 = scmp.lt.s32.totalorder %s3154_s29, %s3203_s6 }
 0x635   : > { %p2606_p6 = scmp.lt.s32.totalorder %s2604_s16, %s2600_s3 }
 0x636   : > { %p2602_p1 = pnand %p2601_p4, %p2835_p5 }
 0x637   : > { %p2607_p12 = por %p2606_p6, %p2605_p7 }
 0x638   : > { %p2603_p8 = pneg %p2602_p1 }
 0x63a   : > { %p2608_p0 = pnand %p2607_p12, %p2603_p8 }
 0x63c   : > { %2611 = shalt.err (!%p2608_p0)
}
 0x63d   : > { %2326 = dma.vmem_to_hbm [thread:$0]  (%p2835_p5), %s2022_s13, 128, %s3154_s29, %s2007_s12  }
 0x63e PF: > { %s2033_s0 = sand.u32 1, %s2658_s21   ;;  %p3226_p3 = scmp.ne.s32.totalorder %s3211_s30, 0 }
 0x63f   : > { %p3227_p10 = scmp.ge.s32.totalorder %s2678_s26, 2  ;;  %s2034_s8 = scalar_lea.sflag [#allocation8], %s2033_s0 }
 0x641   : > { %p2346_p11 = pnand %p3227_p10, %p3226_p3 }
 0x643   : > { %p2347_p9 = pneg %p2346_p11 }
 0x645   : > { %2653 = dma.done.wait (%p2347_p9), %s2034_s8, 128  }
 0x646   : > { %2655 = vsyncadd (%p2347_p9), %s2034_s8, 4294967168  ;;  %s26_s26 = sadd.s32 1, %s2678_s26   ;;  %s3228_s21 = smov %s2662_s22 }
 0x647   : > { %p23_p13 = scmp.ge.s32.totalorder %s26_s26, 4   ;;  %s3229_s22 = smov %s2666_s23 }
 0x648   : > { %s3230_s23 = smov %s2847_s17  ;;  %s3231_s24 = smov %s2674_s25 }
 0x649   : > { %s3232_s25 = smov %s3234_s15  ;;  %25 = sbr.rel (!%p23_p13) target bundleno = 14 (0xe), region = 122 }
 0x64e   :  { %2039 = vsyncpa [#allocation7], 1 }
 0x64f   :  { %2041 = vsyncpa [#allocation7 + $0x1], 1 }
 0x650   :  { %2042 = vsyncpa [#allocation10], 1 }
 0x651   :  { %2044 = vsyncpa [#allocation10 + $0x1], 1 }
 0x652   :  { %2045 = vsyncpa [#allocation13], 1 }
 0x653   :  { %2046 = vsyncpa [#allocation8], 1 }
 0x654   :  { %2048 = vsyncpa [#allocation8 + $0x1], 1 }

</bundles_post_ra>
